<compile_context>
chip_gen: v6e
topology: v6e:2x2x1
jax: 0.10.0
libtpu: 0.0.40
codegen_flags: <defaults>
</compile_context>

<pallas_src>
import jax
import jax.numpy as jnp
from jax.experimental import pallas as pl
from jax.experimental.pallas import tpu as pltpu

# ----------------------------- config (args) ---------------------------------
VOCAB      = 20
EMB        = 8     # args.embedding_size
CONV       = 8     # args.conv_size
KCONV      = 3     # args.kernel_conv_size
KMAX1      = 2     # args.kernel_max1_size
KMAX2      = 2     # args.kernel_max2_size
HID        = 32    # args.hidden_size
MAX_LEN    = 16
N          = 8     # number of items (batch of K / rows of V / LSTM time steps)

L1         = MAX_LEN - KCONV + 1                       # 14 (conv1 output length)
P1         = L1 // KMAX1                               # 7  (after pool1)
L2         = P1 - KCONV + 1                            # 5  (conv2 output length)
AFTER_SEQ  = L2 // KMAX2                               # 2  (after pool2)
LSTM_IN    = CONV * AFTER_SEQ                          # 16
L2E        = 2 * (L2 - 1) + 1                          # 9  (dilated conv2 length, pre-select)
WIDE       = AFTER_SEQ * N * CONV                      # 128 (pooled feature lanes, wide form)


# ------------------------------- fused kernel ---------------------------------
def encoder_kernel(x_ref, v_ref, s64_ref, s128_ref, s32_ref, out_ref, hk_ref):
    f32 = jnp.float32

    # ---- Seq_encoder: all samples batched along lanes (lane = sample*C + c);
    #      conv taps packed so each conv layer is ONE matmul. Eval-mode BN is
    #      folded into the weights/bias on the host. ----
    x = x_ref[...]                                                 # (MAX_LEN, N*EMB)
    x_taps = jnp.concatenate([x[0:L1, :], x[1:1 + L1, :], x[2:2 + L1, :]], axis=1)
    h1 = jnp.dot(x_taps, s64_ref[0:192, :], preferred_element_type=f32)
    h1 = jnp.maximum(h1 + s64_ref[448:449, :], 0.0)                # conv1 + BN + ReLU
    m1 = jnp.maximum(h1[0:L1 - 1, :], h1[1:L1, :])                 # adjacent max (pool1, VPU)

    # conv2 after pool1 == dilation-2 conv on m1; stride-2 select deferred
    m_taps = jnp.concatenate([m1[0:L2E, :], m1[2:2 + L2E, :], m1[4:4 + L2E, :]], axis=1)
    h2 = jnp.dot(m_taps, s64_ref[192:384, :], preferred_element_type=f32)
    h2 = jnp.maximum(h2 + s64_ref[456:457, :], 0.0)                # conv2 + BN + ReLU
    m2 = jnp.maximum(h2[0:L2E - 2, :], h2[2:L2E, :])               # adjacent max (pool2, VPU)

    # ---- LSTM input projection. Valid pooled positions are rows 0 and 4 of m2.
    #      The per-sample lane->row gather is folded into a masked sublane
    #      broadcast + block-structured W_ih (one matmul, no lane shuffles). ----
    r01 = jnp.concatenate([m2[0:1, :], m2[4:5, :]], axis=1)        # (1, 128)
    rb = r01 * s128_ref[160:168, :]                                # (8, 128): sample-masked rows
    xw = (jnp.dot(rb, s128_ref[0:128, :], preferred_element_type=f32)
          + s128_ref[168:169, :])                                  # (N, 4H) pre-activations

    # ---- LSTM over the N "time steps" (+ fused ReLU), fully unrolled ----
    whh = s128_ref[128:160, :]                                     # (H, 4H), g cols pre-scaled x2
    h = jnp.zeros((1, HID), f32)
    c = jnp.zeros((1, HID), f32)
    for t in range(N):
        gates = xw[t:t + 1, :] + jnp.dot(h, whh, preferred_element_type=f32)
        sg = jax.nn.sigmoid(gates)                                 # one 128-lane EUP pass
        i_g = sg[:, 0:HID]
        f_g = sg[:, HID:2 * HID]
        g_g = 2.0 * sg[:, 2 * HID:3 * HID] - 1.0                   # tanh(x) = 2*sigmoid(2x) - 1
        o_g = sg[:, 3 * HID:4 * HID]
        c = f_g * c + i_g * g_g
        h = o_g * jnp.tanh(c)
        hk_ref[t:t + 1, :] = jnp.maximum(h, 0.0)                   # F.relu(H_K) -> VMEM scratch
    hk = hk_ref[...]                                               # (N, H)

    # ---- attention mask + Refinement (att 1x1-conv and Linear(2H->H) fused) ----
    V = v_ref[...]                                                 # (N, H)
    vhk = jnp.concatenate([V, hk], axis=1)                         # (N, 2H)
    z = jnp.dot(vhk, s64_ref[384:448, :], preferred_element_type=f32) + s64_ref[464:465, :]
    vmask = jax.nn.sigmoid(z[:, 0:HID])                            # sigmoid(Conv1d k=1 on V^T)^T
    h1l = jnp.maximum(z[:, HID:2 * HID], 0.0)                      # ReLU(Linear(2H->H))
    msg = (jnp.dot(h1l, s32_ref[0:32, :], preferred_element_type=f32)
           + s32_ref[32:33, :]) * vmask                            # (N, H)
    mes_mean = jnp.mean(msg, axis=0, keepdims=True)                # mean over dim=-2
    xo = V + mes_mean                                              # dropout == identity (eval)
    mu = jnp.mean(xo, axis=-1, keepdims=True)
    var = jnp.mean((xo - mu) ** 2, axis=-1, keepdims=True)
    out_ref[...] = (s32_ref[40:41, :] * (xo - mu) * jax.lax.rsqrt(var + 1e-6)
                    + s32_ref[48:49, :])


# ------------------------------ parameters -------------------------------------
def init_params(key):
    ks = jax.random.split(key, 16)
    nrm = lambda k, shape, s=0.1: s * jax.random.normal(k, shape, jnp.float32)
    p = {}
    emb = nrm(ks[0], (VOCAB, EMB))
    p["embed"] = emb.at[0].set(0.0)                       # padding_idx=0
    p["conv1_w"] = nrm(ks[1], (CONV, EMB, KCONV))
    p["conv1_b"] = nrm(ks[2], (CONV,))
    p["bn1_gamma"] = jnp.ones((CONV,), jnp.float32)
    p["bn1_beta"] = jnp.zeros((CONV,), jnp.float32)
    p["bn1_mean"] = jnp.zeros((CONV,), jnp.float32)
    p["bn1_var"] = jnp.ones((CONV,), jnp.float32)
    p["conv2_w"] = nrm(ks[3], (CONV, CONV, KCONV))
    p["conv2_b"] = nrm(ks[4], (CONV,))
    p["bn2_gamma"] = jnp.ones((CONV,), jnp.float32)
    p["bn2_beta"] = jnp.zeros((CONV,), jnp.float32)
    p["bn2_mean"] = jnp.zeros((CONV,), jnp.float32)
    p["bn2_var"] = jnp.ones((CONV,), jnp.float32)
    p["lstm_wih"] = nrm(ks[5], (4 * HID, LSTM_IN))
    p["lstm_whh"] = nrm(ks[6], (4 * HID, HID))
    p["lstm_bih"] = nrm(ks[7], (4 * HID,))
    p["lstm_bhh"] = nrm(ks[8], (4 * HID,))
    p["att_w"] = nrm(ks[9], (HID, HID, 1))
    p["att_b"] = nrm(ks[10], (HID,))
    p["lin1_w"] = nrm(ks[11], (HID, 2 * HID))
    p["lin1_b"] = nrm(ks[12], (HID,))
    p["lin2_w"] = nrm(ks[13], (HID, HID))
    p["lin2_b"] = nrm(ks[14], (HID,))
    p["norm_a"] = jnp.ones((HID,), jnp.float32)
    p["norm_b"] = jnp.zeros((HID,), jnp.float32)
    return p


# ---------------------- one-time host-side weight prep --------------------------
def prepare_params(p):
    """Fold/pack all weights ONCE; reuse the returned slabs for every forward."""
    eps = 1e-5
    f32 = jnp.float32
    eye_n = jnp.eye(N, dtype=f32)

    # --- fold eval-mode BN into conv weights/bias; block-diag (kron) over samples;
    #     stack the KCONV taps along the contraction dim (1 matmul per conv layer)
    s1 = p["bn1_gamma"] / jnp.sqrt(p["bn1_var"] + eps)
    t1 = p["bn1_beta"] - p["bn1_mean"] * s1
    s2 = p["bn2_gamma"] / jnp.sqrt(p["bn2_var"] + eps)
    t2 = p["bn2_beta"] - p["bn2_mean"] * s2
    w1r = jnp.transpose(p["conv1_w"], (2, 1, 0)) * s1[None, None, :]   # (k, Cin, Cout)
    w2r = jnp.transpose(p["conv2_w"], (2, 1, 0)) * s2[None, None, :]
    w1cat = jnp.concatenate([jnp.kron(eye_n, w1r[dk]) for dk in range(KCONV)], axis=0)  # (192,64)
    w2cat = jnp.concatenate([jnp.kron(eye_n, w2r[dk]) for dk in range(KCONV)], axis=0)  # (192,64)
    b1w = jnp.tile(p["conv1_b"] * s1 + t1, (N,)).reshape(1, N * CONV)
    b2w = jnp.tile(p["conv2_b"] * s2 + t2, (N,)).reshape(1, N * CONV)

    # --- attention 1x1-conv + Linear(2H->H) fused into one RHS ---
    watt_t = p["att_w"][:, :, 0].T                                  # (H, H)
    w1_t = p["lin1_w"].T                                            # (2H, H): [:H]->V, [H:]->H_K
    rcat = jnp.concatenate(
        [jnp.concatenate([watt_t, w1_t[:HID]], axis=1),
         jnp.concatenate([jnp.zeros((HID, HID), f32), w1_t[HID:]], axis=1)], axis=0)  # (2H,2H)
    bcat = jnp.concatenate([p["att_b"], p["lin1_b"]]).reshape(1, 2 * HID)

    # --- LSTM: g-gate columns pre-scaled by 2 (tanh(x)=2*sigmoid(2x)-1);
    #     W_ih block-structured so the per-sample gather of pooled features is
    #     folded into the input-projection matmul (mask + wide weight block) ---
    gscale = jnp.concatenate([jnp.ones(2 * HID, f32), 2.0 * jnp.ones(HID, f32),
                              jnp.ones(HID, f32)])
    wih_t = p["lstm_wih"].T * gscale[None, :]                       # (LSTM_IN, 4H), row = c*S + s
    whh_t = p["lstm_whh"].T * gscale[None, :]                       # (H, 4H)
    lstm_b = ((p["lstm_bih"] + p["lstm_bhh"]) * gscale).reshape(1, 4 * HID)
    j = jnp.arange(WIDE)                                            # wide pooled-feature lane idx
    s_j = j // (N * CONV)                                           # pooled position
    i_j = (j % (N * CONV)) // CONV                                  # sample
    c_j = j % CONV                                                  # channel
    wblk = wih_t[c_j * AFTER_SEQ + s_j, :]                          # (128, 4H)
    mask8 = (i_j[None, :] == jnp.arange(N)[:, None]).astype(f32)    # (N, 128) sample mask

    # --- pack everything into three lane-width-grouped slabs (3 prologue DMAs) ---
    s64 = jnp.zeros((472, 64), f32)
    s64 = s64.at[0:192].set(w1cat).at[192:384].set(w2cat).at[384:448].set(rcat)
    s64 = s64.at[448:449].set(b1w).at[456:457].set(b2w).at[464:465].set(bcat)

    s128 = jnp.zeros((176, 128), f32)
    s128 = s128.at[0:128].set(wblk).at[128:160].set(whh_t)
    s128 = s128.at[160:168].set(mask8).at[168:169].set(lstm_b)

    s32 = jnp.zeros((56, 32), f32)
    s32 = s32.at[0:32].set(p["lin2_w"].T).at[32:33].set(p["lin2_b"].reshape(1, HID))
    s32 = s32.at[40:41].set(p["norm_a"].reshape(1, HID)).at[48:49].set(p["norm_b"].reshape(1, HID))

    return {"embed": p["embed"], "s64": s64, "s128": s128, "s32": s32}


# ------------------------------ forward (wrapper) -------------------------------
@jax.jit
def encoder_forward(V, K_tokens, prep):
    n = V.shape[0]
    # embedding lookup (tiny gather; the only per-call XLA work besides the kernel)
    emb = prep["embed"][K_tokens]                                   # (N, L, E)
    x_wide = jnp.transpose(emb, (1, 0, 2)).reshape(MAX_LEN, n * EMB)

    vmem = pl.BlockSpec(memory_space=pltpu.MemorySpace.VMEM)
    return pl.pallas_call(
        encoder_kernel,
        out_shape=jax.ShapeDtypeStruct((n, HID), jnp.float32),
        in_specs=[vmem] * 5,
        out_specs=vmem,
        scratch_shapes=[pltpu.VMEM((n, HID), jnp.float32)],
    )(x_wide, V, prep["s64"], prep["s128"], prep["s32"])


# --------------------------- pure-JAX reference (check) -------------------------
@jax.jit
def reference_forward(V, K_tokens, p):
    eps = 1e-5
    emb = p["embed"][K_tokens]                                      # (N, L, E)
    x = jnp.transpose(emb, (0, 2, 1))                               # (N, E, L)

    def conv1d(x, w, b):                                            # w: (Cout, Cin, k)
        k = w.shape[-1]
        lout = x.shape[-1] - k + 1
        out = jnp.zeros((x.shape[0], w.shape[0], lout), jnp.float32)
        for dk in range(k):
            out = out + jnp.einsum('ncl,oc->nol', x[:, :, dk:dk + lout], w[:, :, dk])
        return out + b[None, :, None]

    def bn(x, g, bt, m, v):
        s = g / jnp.sqrt(v + eps)
        return (x - m[None, :, None]) * s[None, :, None] + bt[None, :, None]

    def maxpool(x, k):
        lout = x.shape[-1] // k
        return x[:, :, :lout * k].reshape(x.shape[0], x.shape[1], lout, k).max(axis=-1)

    h = conv1d(x, p["conv1_w"], p["conv1_b"])
    h = jnp.maximum(bn(h, p["bn1_gamma"], p["bn1_beta"], p["bn1_mean"], p["bn1_var"]), 0.0)
    h = maxpool(h, KMAX1)
    h = conv1d(h, p["conv2_w"], p["conv2_b"])
    h = jnp.maximum(bn(h, p["bn2_gamma"], p["bn2_beta"], p["bn2_mean"], p["bn2_var"]), 0.0)
    h = maxpool(h, KMAX2)
    feat = h.reshape(h.shape[0], -1)                                # (N, C*S), c-major

    wih, whh = p["lstm_wih"], p["lstm_whh"]
    b = p["lstm_bih"] + p["lstm_bhh"]

    def step(carry, x_t):
        hh, cc = carry
        gates = x_t @ wih.T + hh @ whh.T + b
        i = jax.nn.sigmoid(gates[0:HID])
        f = jax.nn.sigmoid(gates[HID:2 * HID])
        g = jnp.tanh(gates[2 * HID:3 * HID])
        o = jax.nn.sigmoid(gates[3 * HID:4 * HID])
        cc = f * cc + i * g
        hh = o * jnp.tanh(cc)
        return (hh, cc), hh

    (_, _), hs = jax.lax.scan(step, (jnp.zeros(HID), jnp.zeros(HID)), feat)
    hk = jnp.maximum(hs, 0.0)

    vhk = jnp.concatenate([V, hk], axis=-1)
    vmask = jax.nn.sigmoid(V @ p["att_w"][:, :, 0].T + p["att_b"])
    h1 = jnp.maximum(vhk @ p["lin1_w"].T + p["lin1_b"], 0.0)
    msg = (h1 @ p["lin2_w"].T + p["lin2_b"]) * vmask
    mes_mean = jnp.mean(msg, axis=-2)
    xo = V + mes_mean
    mu = jnp.mean(xo, axis=-1, keepdims=True)
    var = jnp.mean((xo - mu) ** 2, axis=-1, keepdims=True)
    return p["norm_a"] * (xo - mu) / jnp.sqrt(var + 1e-6) + p["norm_b"]


# -------------------------------- main ------------------------------------------
if __name__ == "__main__":
    key = jax.random.PRNGKey(0)
    k_params, k_tok, k_v = jax.random.split(key, 3)
    params = init_params(k_params)
    prep = prepare_params(params)          # one-time host-side weight prep (cached)

    K_tokens = jax.random.randint(k_tok, (N, MAX_LEN), 0, VOCAB, dtype=jnp.int32)
    V = jax.random.normal(k_v, (N, HID), jnp.float32)

    out = jax.block_until_ready(encoder_forward(V, K_tokens, prep))
    ref = jax.block_until_ready(reference_forward(V, K_tokens, params))

    assert out.shape == (N, HID)
    assert bool(jnp.all(jnp.isfinite(out)))
    err = float(jnp.max(jnp.abs(out - ref)))
    assert bool(jnp.allclose(out, ref, rtol=2e-4, atol=2e-4)), err
    print("KERNEL_OK")
</pallas_src>

<mosaic_0001>
module attributes {stable_mosaic.version = 11 : i64} {
  func.func @encoder_kernel(%arg0: memref<16x64xf32, #tpu.memory_space<vmem>>, %arg1: memref<8x32xf32, #tpu.memory_space<vmem>>, %arg2: memref<472x64xf32, #tpu.memory_space<vmem>>, %arg3: memref<176x128xf32, #tpu.memory_space<vmem>>, %arg4: memref<56x32xf32, #tpu.memory_space<vmem>>, %arg5: memref<8x32xf32, #tpu.memory_space<vmem>>, %arg6: memref<8x32xf32, #tpu.memory_space<vmem>>) attributes {dimension_semantics = [], scalar_prefetch = 0 : i64, scratch_operands = 1 : i64, tpu.core_type = #tpu.core_type<tc>} {
    %c0 = arith.constant 0 : index
    %c0_0 = arith.constant 0 : index
    %0 = vector.load %arg0[%c0, %c0_0] : memref<16x64xf32, #tpu.memory_space<vmem>>, vector<16x64xf32>
    %1 = vector.extract_strided_slice %0 {offsets = [0, 0], sizes = [14, 64], strides = [1, 1]} : vector<16x64xf32> to vector<14x64xf32>
    %2 = vector.extract_strided_slice %0 {offsets = [1, 0], sizes = [14, 64], strides = [1, 1]} : vector<16x64xf32> to vector<14x64xf32>
    %3 = vector.extract_strided_slice %0 {offsets = [2, 0], sizes = [14, 64], strides = [1, 1]} : vector<16x64xf32> to vector<14x64xf32>
    %4 = tpu.concatenate %1, %2, %3 in 1 : vector<14x64xf32>, vector<14x64xf32>, vector<14x64xf32> -> vector<14x192xf32>
    %c0_1 = arith.constant 0 : index
    %c0_2 = arith.constant 0 : index
    %5 = vector.load %arg2[%c0_1, %c0_2] : memref<472x64xf32, #tpu.memory_space<vmem>>, vector<192x64xf32>
    %cst = arith.constant dense<0.000000e+00> : vector<14x64xf32>
    %6 = tpu.matmul %4, %5, %cst {dimension_numbers = #tpu.dot_dimension_numbers<[1], [0], [0], [1], [0, 0, 1, 1], [], []>} : vector<14x192xf32>, vector<192x64xf32>, vector<14x64xf32> -> vector<14x64xf32>
    %c448 = arith.constant 448 : index
    %c0_3 = arith.constant 0 : index
    %7 = vector.load %arg2[%c448, %c0_3] : memref<472x64xf32, #tpu.memory_space<vmem>>, vector<1x64xf32>
    %8 = vector.broadcast %7 : vector<1x64xf32> to vector<14x64xf32>
    %9 = arith.addf %6, %8 : vector<14x64xf32>
    %cst_4 = arith.constant 0.000000e+00 : f32
    %10 = vector.broadcast %cst_4 : f32 to vector<14x64xf32>
    %11 = arith.maximumf %9, %10 : vector<14x64xf32>
    %12 = vector.extract_strided_slice %11 {offsets = [0, 0], sizes = [13, 64], strides = [1, 1]} : vector<14x64xf32> to vector<13x64xf32>
    %13 = vector.extract_strided_slice %11 {offsets = [1, 0], sizes = [13, 64], strides = [1, 1]} : vector<14x64xf32> to vector<13x64xf32>
    %14 = arith.maximumf %12, %13 : vector<13x64xf32>
    %15 = vector.extract_strided_slice %14 {offsets = [0, 0], sizes = [9, 64], strides = [1, 1]} : vector<13x64xf32> to vector<9x64xf32>
    %16 = vector.extract_strided_slice %14 {offsets = [2, 0], sizes = [9, 64], strides = [1, 1]} : vector<13x64xf32> to vector<9x64xf32>
    %17 = vector.extract_strided_slice %14 {offsets = [4, 0], sizes = [9, 64], strides = [1, 1]} : vector<13x64xf32> to vector<9x64xf32>
    %18 = tpu.concatenate %15, %16, %17 in 1 : vector<9x64xf32>, vector<9x64xf32>, vector<9x64xf32> -> vector<9x192xf32>
    %c192 = arith.constant 192 : index
    %c0_5 = arith.constant 0 : index
    %19 = vector.load %arg2[%c192, %c0_5] : memref<472x64xf32, #tpu.memory_space<vmem>>, vector<192x64xf32>
    %cst_6 = arith.constant dense<0.000000e+00> : vector<9x64xf32>
    %20 = tpu.matmul %18, %19, %cst_6 {dimension_numbers = #tpu.dot_dimension_numbers<[1], [0], [0], [1], [0, 0, 1, 1], [], []>} : vector<9x192xf32>, vector<192x64xf32>, vector<9x64xf32> -> vector<9x64xf32>
    %c456 = arith.constant 456 : index
    %c0_7 = arith.constant 0 : index
    %21 = vector.load %arg2[%c456, %c0_7] : memref<472x64xf32, #tpu.memory_space<vmem>>, vector<1x64xf32>
    %22 = vector.broadcast %21 : vector<1x64xf32> to vector<9x64xf32>
    %23 = arith.addf %20, %22 : vector<9x64xf32>
    %cst_8 = arith.constant 0.000000e+00 : f32
    %24 = vector.broadcast %cst_8 : f32 to vector<9x64xf32>
    %25 = arith.maximumf %23, %24 : vector<9x64xf32>
    %26 = vector.extract_strided_slice %25 {offsets = [0, 0], sizes = [7, 64], strides = [1, 1]} : vector<9x64xf32> to vector<7x64xf32>
    %27 = vector.extract_strided_slice %25 {offsets = [2, 0], sizes = [7, 64], strides = [1, 1]} : vector<9x64xf32> to vector<7x64xf32>
    %28 = arith.maximumf %26, %27 : vector<7x64xf32>
    %29 = vector.extract_strided_slice %28 {offsets = [0, 0], sizes = [1, 64], strides = [1, 1]} : vector<7x64xf32> to vector<1x64xf32>
    %30 = vector.extract_strided_slice %28 {offsets = [4, 0], sizes = [1, 64], strides = [1, 1]} : vector<7x64xf32> to vector<1x64xf32>
    %31 = tpu.concatenate %29, %30 in 1 : vector<1x64xf32>, vector<1x64xf32> -> vector<1x128xf32>
    %c160 = arith.constant 160 : index
    %c0_9 = arith.constant 0 : index
    %32 = vector.load %arg3[%c160, %c0_9] : memref<176x128xf32, #tpu.memory_space<vmem>>, vector<8x128xf32>
    %33 = vector.broadcast %31 : vector<1x128xf32> to vector<8x128xf32>
    %34 = arith.mulf %33, %32 : vector<8x128xf32>
    %c0_10 = arith.constant 0 : index
    %c0_11 = arith.constant 0 : index
    %35 = vector.load %arg3[%c0_10, %c0_11] : memref<176x128xf32, #tpu.memory_space<vmem>>, vector<128x128xf32>
    %cst_12 = arith.constant dense<0.000000e+00> : vector<8x128xf32>
    %36 = tpu.matmul %34, %35, %cst_12 {dimension_numbers = #tpu.dot_dimension_numbers<[1], [0], [0], [1], [0, 0, 1, 1], [], []>} : vector<8x128xf32>, vector<128x128xf32>, vector<8x128xf32> -> vector<8x128xf32>
    %c168 = arith.constant 168 : index
    %c0_13 = arith.constant 0 : index
    %37 = vector.load %arg3[%c168, %c0_13] : memref<176x128xf32, #tpu.memory_space<vmem>>, vector<1x128xf32>
    %38 = vector.broadcast %37 : vector<1x128xf32> to vector<8x128xf32>
    %39 = arith.addf %36, %38 : vector<8x128xf32>
    %c128 = arith.constant 128 : index
    %c0_14 = arith.constant 0 : index
    %40 = vector.load %arg3[%c128, %c0_14] : memref<176x128xf32, #tpu.memory_space<vmem>>, vector<32x128xf32>
    %cst_15 = arith.constant 0.000000e+00 : f32
    %41 = vector.broadcast %cst_15 : f32 to vector<1x32xf32>
    %cst_16 = arith.constant 0.000000e+00 : f32
    %42 = vector.broadcast %cst_16 : f32 to vector<1x32xf32>
    %43 = vector.extract_strided_slice %39 {offsets = [0, 0], sizes = [1, 128], strides = [1, 1]} : vector<8x128xf32> to vector<1x128xf32>
    %cst_17 = arith.constant dense<0.000000e+00> : vector<1x128xf32>
    %44 = tpu.matmul %41, %40, %cst_17 {dimension_numbers = #tpu.dot_dimension_numbers<[1], [0], [0], [1], [0, 0, 1, 1], [], []>} : vector<1x32xf32>, vector<32x128xf32>, vector<1x128xf32> -> vector<1x128xf32>
    %45 = arith.addf %43, %44 : vector<1x128xf32>
    %46 = arith.negf %45 : vector<1x128xf32>
    %47 = math.exp %46 : vector<1x128xf32>
    %cst_18 = arith.constant 1.000000e+00 : f32
    %48 = vector.broadcast %cst_18 : f32 to vector<1x128xf32>
    %49 = arith.addf %48, %47 : vector<1x128xf32>
    %50 = arith.divf %48, %49 : vector<1x128xf32>
    %51 = vector.extract_strided_slice %50 {offsets = [0, 0], sizes = [1, 32], strides = [1, 1]} : vector<1x128xf32> to vector<1x32xf32>
    %52 = vector.extract_strided_slice %50 {offsets = [0, 32], sizes = [1, 32], strides = [1, 1]} : vector<1x128xf32> to vector<1x32xf32>
    %53 = vector.extract_strided_slice %50 {offsets = [0, 64], sizes = [1, 32], strides = [1, 1]} : vector<1x128xf32> to vector<1x32xf32>
    %cst_19 = arith.constant 2.000000e+00 : f32
    %54 = vector.broadcast %cst_19 : f32 to vector<1x32xf32>
    %55 = arith.mulf %54, %53 : vector<1x32xf32>
    %cst_20 = arith.constant 1.000000e+00 : f32
    %56 = vector.broadcast %cst_20 : f32 to vector<1x32xf32>
    %57 = arith.subf %55, %56 : vector<1x32xf32>
    %58 = vector.extract_strided_slice %50 {offsets = [0, 96], sizes = [1, 32], strides = [1, 1]} : vector<1x128xf32> to vector<1x32xf32>
    %59 = arith.mulf %52, %42 : vector<1x32xf32>
    %60 = arith.mulf %51, %57 : vector<1x32xf32>
    %61 = arith.addf %59, %60 : vector<1x32xf32>
    %62 = math.tanh %61 : vector<1x32xf32>
    %63 = arith.mulf %58, %62 : vector<1x32xf32>
    %cst_21 = arith.constant 0.000000e+00 : f32
    %64 = vector.broadcast %cst_21 : f32 to vector<1x32xf32>
    %65 = arith.maximumf %63, %64 : vector<1x32xf32>
    %c0_22 = arith.constant 0 : index
    %c0_23 = arith.constant 0 : index
    %66 = vector.load %arg6[%c0_22, %c0_23] : memref<8x32xf32, #tpu.memory_space<vmem>>, vector<1x32xf32>
    tpu.vector_store %arg6[%c0_22, %c0_23], %65 {strides = array<i32>} : memref<8x32xf32, #tpu.memory_space<vmem>>, vector<1x32xf32>,
    %67 = vector.extract_strided_slice %39 {offsets = [1, 0], sizes = [1, 128], strides = [1, 1]} : vector<8x128xf32> to vector<1x128xf32>
    %cst_24 = arith.constant dense<0.000000e+00> : vector<1x128xf32>
    %68 = tpu.matmul %63, %40, %cst_24 {dimension_numbers = #tpu.dot_dimension_numbers<[1], [0], [0], [1], [0, 0, 1, 1], [], []>} : vector<1x32xf32>, vector<32x128xf32>, vector<1x128xf32> -> vector<1x128xf32>
    %69 = arith.addf %67, %68 : vector<1x128xf32>
    %70 = arith.negf %69 : vector<1x128xf32>
    %71 = math.exp %70 : vector<1x128xf32>
    %cst_25 = arith.constant 1.000000e+00 : f32
    %72 = vector.broadcast %cst_25 : f32 to vector<1x128xf32>
    %73 = arith.addf %72, %71 : vector<1x128xf32>
    %74 = arith.divf %72, %73 : vector<1x128xf32>
    %75 = vector.extract_strided_slice %74 {offsets = [0, 0], sizes = [1, 32], strides = [1, 1]} : vector<1x128xf32> to vector<1x32xf32>
    %76 = vector.extract_strided_slice %74 {offsets = [0, 32], sizes = [1, 32], strides = [1, 1]} : vector<1x128xf32> to vector<1x32xf32>
    %77 = vector.extract_strided_slice %74 {offsets = [0, 64], sizes = [1, 32], strides = [1, 1]} : vector<1x128xf32> to vector<1x32xf32>
    %cst_26 = arith.constant 2.000000e+00 : f32
    %78 = vector.broadcast %cst_26 : f32 to vector<1x32xf32>
    %79 = arith.mulf %78, %77 : vector<1x32xf32>
    %cst_27 = arith.constant 1.000000e+00 : f32
    %80 = vector.broadcast %cst_27 : f32 to vector<1x32xf32>
    %81 = arith.subf %79, %80 : vector<1x32xf32>
    %82 = vector.extract_strided_slice %74 {offsets = [0, 96], sizes = [1, 32], strides = [1, 1]} : vector<1x128xf32> to vector<1x32xf32>
    %83 = arith.mulf %76, %61 : vector<1x32xf32>
    %84 = arith.mulf %75, %81 : vector<1x32xf32>
    %85 = arith.addf %83, %84 : vector<1x32xf32>
    %86 = math.tanh %85 : vector<1x32xf32>
    %87 = arith.mulf %82, %86 : vector<1x32xf32>
    %cst_28 = arith.constant 0.000000e+00 : f32
    %88 = vector.broadcast %cst_28 : f32 to vector<1x32xf32>
    %89 = arith.maximumf %87, %88 : vector<1x32xf32>
    %c1 = arith.constant 1 : index
    %c0_29 = arith.constant 0 : index
    %90 = vector.load %arg6[%c1, %c0_29] : memref<8x32xf32, #tpu.memory_space<vmem>>, vector<1x32xf32>
    tpu.vector_store %arg6[%c1, %c0_29], %89 {strides = array<i32>} : memref<8x32xf32, #tpu.memory_space<vmem>>, vector<1x32xf32>,
    %91 = vector.extract_strided_slice %39 {offsets = [2, 0], sizes = [1, 128], strides = [1, 1]} : vector<8x128xf32> to vector<1x128xf32>
    %cst_30 = arith.constant dense<0.000000e+00> : vector<1x128xf32>
    %92 = tpu.matmul %87, %40, %cst_30 {dimension_numbers = #tpu.dot_dimension_numbers<[1], [0], [0], [1], [0, 0, 1, 1], [], []>} : vector<1x32xf32>, vector<32x128xf32>, vector<1x128xf32> -> vector<1x128xf32>
    %93 = arith.addf %91, %92 : vector<1x128xf32>
    %94 = arith.negf %93 : vector<1x128xf32>
    %95 = math.exp %94 : vector<1x128xf32>
    %cst_31 = arith.constant 1.000000e+00 : f32
    %96 = vector.broadcast %cst_31 : f32 to vector<1x128xf32>
    %97 = arith.addf %96, %95 : vector<1x128xf32>
    %98 = arith.divf %96, %97 : vector<1x128xf32>
    %99 = vector.extract_strided_slice %98 {offsets = [0, 0], sizes = [1, 32], strides = [1, 1]} : vector<1x128xf32> to vector<1x32xf32>
    %100 = vector.extract_strided_slice %98 {offsets = [0, 32], sizes = [1, 32], strides = [1, 1]} : vector<1x128xf32> to vector<1x32xf32>
    %101 = vector.extract_strided_slice %98 {offsets = [0, 64], sizes = [1, 32], strides = [1, 1]} : vector<1x128xf32> to vector<1x32xf32>
    %cst_32 = arith.constant 2.000000e+00 : f32
    %102 = vector.broadcast %cst_32 : f32 to vector<1x32xf32>
    %103 = arith.mulf %102, %101 : vector<1x32xf32>
    %cst_33 = arith.constant 1.000000e+00 : f32
    %104 = vector.broadcast %cst_33 : f32 to vector<1x32xf32>
    %105 = arith.subf %103, %104 : vector<1x32xf32>
    %106 = vector.extract_strided_slice %98 {offsets = [0, 96], sizes = [1, 32], strides = [1, 1]} : vector<1x128xf32> to vector<1x32xf32>
    %107 = arith.mulf %100, %85 : vector<1x32xf32>
    %108 = arith.mulf %99, %105 : vector<1x32xf32>
    %109 = arith.addf %107, %108 : vector<1x32xf32>
    %110 = math.tanh %109 : vector<1x32xf32>
    %111 = arith.mulf %106, %110 : vector<1x32xf32>
    %cst_34 = arith.constant 0.000000e+00 : f32
    %112 = vector.broadcast %cst_34 : f32 to vector<1x32xf32>
    %113 = arith.maximumf %111, %112 : vector<1x32xf32>
    %c2 = arith.constant 2 : index
    %c0_35 = arith.constant 0 : index
    %114 = vector.load %arg6[%c2, %c0_35] : memref<8x32xf32, #tpu.memory_space<vmem>>, vector<1x32xf32>
    tpu.vector_store %arg6[%c2, %c0_35], %113 {strides = array<i32>} : memref<8x32xf32, #tpu.memory_space<vmem>>, vector<1x32xf32>,
    %115 = vector.extract_strided_slice %39 {offsets = [3, 0], sizes = [1, 128], strides = [1, 1]} : vector<8x128xf32> to vector<1x128xf32>
    %cst_36 = arith.constant dense<0.000000e+00> : vector<1x128xf32>
    %116 = tpu.matmul %111, %40, %cst_36 {dimension_numbers = #tpu.dot_dimension_numbers<[1], [0], [0], [1], [0, 0, 1, 1], [], []>} : vector<1x32xf32>, vector<32x128xf32>, vector<1x128xf32> -> vector<1x128xf32>
    %117 = arith.addf %115, %116 : vector<1x128xf32>
    %118 = arith.negf %117 : vector<1x128xf32>
    %119 = math.exp %118 : vector<1x128xf32>
    %cst_37 = arith.constant 1.000000e+00 : f32
    %120 = vector.broadcast %cst_37 : f32 to vector<1x128xf32>
    %121 = arith.addf %120, %119 : vector<1x128xf32>
    %122 = arith.divf %120, %121 : vector<1x128xf32>
    %123 = vector.extract_strided_slice %122 {offsets = [0, 0], sizes = [1, 32], strides = [1, 1]} : vector<1x128xf32> to vector<1x32xf32>
    %124 = vector.extract_strided_slice %122 {offsets = [0, 32], sizes = [1, 32], strides = [1, 1]} : vector<1x128xf32> to vector<1x32xf32>
    %125 = vector.extract_strided_slice %122 {offsets = [0, 64], sizes = [1, 32], strides = [1, 1]} : vector<1x128xf32> to vector<1x32xf32>
    %cst_38 = arith.constant 2.000000e+00 : f32
    %126 = vector.broadcast %cst_38 : f32 to vector<1x32xf32>
    %127 = arith.mulf %126, %125 : vector<1x32xf32>
    %cst_39 = arith.constant 1.000000e+00 : f32
    %128 = vector.broadcast %cst_39 : f32 to vector<1x32xf32>
    %129 = arith.subf %127, %128 : vector<1x32xf32>
    %130 = vector.extract_strided_slice %122 {offsets = [0, 96], sizes = [1, 32], strides = [1, 1]} : vector<1x128xf32> to vector<1x32xf32>
    %131 = arith.mulf %124, %109 : vector<1x32xf32>
    %132 = arith.mulf %123, %129 : vector<1x32xf32>
    %133 = arith.addf %131, %132 : vector<1x32xf32>
    %134 = math.tanh %133 : vector<1x32xf32>
    %135 = arith.mulf %130, %134 : vector<1x32xf32>
    %cst_40 = arith.constant 0.000000e+00 : f32
    %136 = vector.broadcast %cst_40 : f32 to vector<1x32xf32>
    %137 = arith.maximumf %135, %136 : vector<1x32xf32>
    %c3 = arith.constant 3 : index
    %c0_41 = arith.constant 0 : index
    %138 = vector.load %arg6[%c3, %c0_41] : memref<8x32xf32, #tpu.memory_space<vmem>>, vector<1x32xf32>
    tpu.vector_store %arg6[%c3, %c0_41], %137 {strides = array<i32>} : memref<8x32xf32, #tpu.memory_space<vmem>>, vector<1x32xf32>,
    %139 = vector.extract_strided_slice %39 {offsets = [4, 0], sizes = [1, 128], strides = [1, 1]} : vector<8x128xf32> to vector<1x128xf32>
    %cst_42 = arith.constant dense<0.000000e+00> : vector<1x128xf32>
    %140 = tpu.matmul %135, %40, %cst_42 {dimension_numbers = #tpu.dot_dimension_numbers<[1], [0], [0], [1], [0, 0, 1, 1], [], []>} : vector<1x32xf32>, vector<32x128xf32>, vector<1x128xf32> -> vector<1x128xf32>
    %141 = arith.addf %139, %140 : vector<1x128xf32>
    %142 = arith.negf %141 : vector<1x128xf32>
    %143 = math.exp %142 : vector<1x128xf32>
    %cst_43 = arith.constant 1.000000e+00 : f32
    %144 = vector.broadcast %cst_43 : f32 to vector<1x128xf32>
    %145 = arith.addf %144, %143 : vector<1x128xf32>
    %146 = arith.divf %144, %145 : vector<1x128xf32>
    %147 = vector.extract_strided_slice %146 {offsets = [0, 0], sizes = [1, 32], strides = [1, 1]} : vector<1x128xf32> to vector<1x32xf32>
    %148 = vector.extract_strided_slice %146 {offsets = [0, 32], sizes = [1, 32], strides = [1, 1]} : vector<1x128xf32> to vector<1x32xf32>
    %149 = vector.extract_strided_slice %146 {offsets = [0, 64], sizes = [1, 32], strides = [1, 1]} : vector<1x128xf32> to vector<1x32xf32>
    %cst_44 = arith.constant 2.000000e+00 : f32
    %150 = vector.broadcast %cst_44 : f32 to vector<1x32xf32>
    %151 = arith.mulf %150, %149 : vector<1x32xf32>
    %cst_45 = arith.constant 1.000000e+00 : f32
    %152 = vector.broadcast %cst_45 : f32 to vector<1x32xf32>
    %153 = arith.subf %151, %152 : vector<1x32xf32>
    %154 = vector.extract_strided_slice %146 {offsets = [0, 96], sizes = [1, 32], strides = [1, 1]} : vector<1x128xf32> to vector<1x32xf32>
    %155 = arith.mulf %148, %133 : vector<1x32xf32>
    %156 = arith.mulf %147, %153 : vector<1x32xf32>
    %157 = arith.addf %155, %156 : vector<1x32xf32>
    %158 = math.tanh %157 : vector<1x32xf32>
    %159 = arith.mulf %154, %158 : vector<1x32xf32>
    %cst_46 = arith.constant 0.000000e+00 : f32
    %160 = vector.broadcast %cst_46 : f32 to vector<1x32xf32>
    %161 = arith.maximumf %159, %160 : vector<1x32xf32>
    %c4 = arith.constant 4 : index
    %c0_47 = arith.constant 0 : index
    %162 = vector.load %arg6[%c4, %c0_47] : memref<8x32xf32, #tpu.memory_space<vmem>>, vector<1x32xf32>
    tpu.vector_store %arg6[%c4, %c0_47], %161 {strides = array<i32>} : memref<8x32xf32, #tpu.memory_space<vmem>>, vector<1x32xf32>,
    %163 = vector.extract_strided_slice %39 {offsets = [5, 0], sizes = [1, 128], strides = [1, 1]} : vector<8x128xf32> to vector<1x128xf32>
    %cst_48 = arith.constant dense<0.000000e+00> : vector<1x128xf32>
    %164 = tpu.matmul %159, %40, %cst_48 {dimension_numbers = #tpu.dot_dimension_numbers<[1], [0], [0], [1], [0, 0, 1, 1], [], []>} : vector<1x32xf32>, vector<32x128xf32>, vector<1x128xf32> -> vector<1x128xf32>
    %165 = arith.addf %163, %164 : vector<1x128xf32>
    %166 = arith.negf %165 : vector<1x128xf32>
    %167 = math.exp %166 : vector<1x128xf32>
    %cst_49 = arith.constant 1.000000e+00 : f32
    %168 = vector.broadcast %cst_49 : f32 to vector<1x128xf32>
    %169 = arith.addf %168, %167 : vector<1x128xf32>
    %170 = arith.divf %168, %169 : vector<1x128xf32>
    %171 = vector.extract_strided_slice %170 {offsets = [0, 0], sizes = [1, 32], strides = [1, 1]} : vector<1x128xf32> to vector<1x32xf32>
    %172 = vector.extract_strided_slice %170 {offsets = [0, 32], sizes = [1, 32], strides = [1, 1]} : vector<1x128xf32> to vector<1x32xf32>
    %173 = vector.extract_strided_slice %170 {offsets = [0, 64], sizes = [1, 32], strides = [1, 1]} : vector<1x128xf32> to vector<1x32xf32>
    %cst_50 = arith.constant 2.000000e+00 : f32
    %174 = vector.broadcast %cst_50 : f32 to vector<1x32xf32>
    %175 = arith.mulf %174, %173 : vector<1x32xf32>
    %cst_51 = arith.constant 1.000000e+00 : f32
    %176 = vector.broadcast %cst_51 : f32 to vector<1x32xf32>
    %177 = arith.subf %175, %176 : vector<1x32xf32>
    %178 = vector.extract_strided_slice %170 {offsets = [0, 96], sizes = [1, 32], strides = [1, 1]} : vector<1x128xf32> to vector<1x32xf32>
    %179 = arith.mulf %172, %157 : vector<1x32xf32>
    %180 = arith.mulf %171, %177 : vector<1x32xf32>
    %181 = arith.addf %179, %180 : vector<1x32xf32>
    %182 = math.tanh %181 : vector<1x32xf32>
    %183 = arith.mulf %178, %182 : vector<1x32xf32>
    %cst_52 = arith.constant 0.000000e+00 : f32
    %184 = vector.broadcast %cst_52 : f32 to vector<1x32xf32>
    %185 = arith.maximumf %183, %184 : vector<1x32xf32>
    %c5 = arith.constant 5 : index
    %c0_53 = arith.constant 0 : index
    %186 = vector.load %arg6[%c5, %c0_53] : memref<8x32xf32, #tpu.memory_space<vmem>>, vector<1x32xf32>
    tpu.vector_store %arg6[%c5, %c0_53], %185 {strides = array<i32>} : memref<8x32xf32, #tpu.memory_space<vmem>>, vector<1x32xf32>,
    %187 = vector.extract_strided_slice %39 {offsets = [6, 0], sizes = [1, 128], strides = [1, 1]} : vector<8x128xf32> to vector<1x128xf32>
    %cst_54 = arith.constant dense<0.000000e+00> : vector<1x128xf32>
    %188 = tpu.matmul %183, %40, %cst_54 {dimension_numbers = #tpu.dot_dimension_numbers<[1], [0], [0], [1], [0, 0, 1, 1], [], []>} : vector<1x32xf32>, vector<32x128xf32>, vector<1x128xf32> -> vector<1x128xf32>
    %189 = arith.addf %187, %188 : vector<1x128xf32>
    %190 = arith.negf %189 : vector<1x128xf32>
    %191 = math.exp %190 : vector<1x128xf32>
    %cst_55 = arith.constant 1.000000e+00 : f32
    %192 = vector.broadcast %cst_55 : f32 to vector<1x128xf32>
    %193 = arith.addf %192, %191 : vector<1x128xf32>
    %194 = arith.divf %192, %193 : vector<1x128xf32>
    %195 = vector.extract_strided_slice %194 {offsets = [0, 0], sizes = [1, 32], strides = [1, 1]} : vector<1x128xf32> to vector<1x32xf32>
    %196 = vector.extract_strided_slice %194 {offsets = [0, 32], sizes = [1, 32], strides = [1, 1]} : vector<1x128xf32> to vector<1x32xf32>
    %197 = vector.extract_strided_slice %194 {offsets = [0, 64], sizes = [1, 32], strides = [1, 1]} : vector<1x128xf32> to vector<1x32xf32>
    %cst_56 = arith.constant 2.000000e+00 : f32
    %198 = vector.broadcast %cst_56 : f32 to vector<1x32xf32>
    %199 = arith.mulf %198, %197 : vector<1x32xf32>
    %cst_57 = arith.constant 1.000000e+00 : f32
    %200 = vector.broadcast %cst_57 : f32 to vector<1x32xf32>
    %201 = arith.subf %199, %200 : vector<1x32xf32>
    %202 = vector.extract_strided_slice %194 {offsets = [0, 96], sizes = [1, 32], strides = [1, 1]} : vector<1x128xf32> to vector<1x32xf32>
    %203 = arith.mulf %196, %181 : vector<1x32xf32>
    %204 = arith.mulf %195, %201 : vector<1x32xf32>
    %205 = arith.addf %203, %204 : vector<1x32xf32>
    %206 = math.tanh %205 : vector<1x32xf32>
    %207 = arith.mulf %202, %206 : vector<1x32xf32>
    %cst_58 = arith.constant 0.000000e+00 : f32
    %208 = vector.broadcast %cst_58 : f32 to vector<1x32xf32>
    %209 = arith.maximumf %207, %208 : vector<1x32xf32>
    %c6 = arith.constant 6 : index
    %c0_59 = arith.constant 0 : index
    %210 = vector.load %arg6[%c6, %c0_59] : memref<8x32xf32, #tpu.memory_space<vmem>>, vector<1x32xf32>
    tpu.vector_store %arg6[%c6, %c0_59], %209 {strides = array<i32>} : memref<8x32xf32, #tpu.memory_space<vmem>>, vector<1x32xf32>,
    %211 = vector.extract_strided_slice %39 {offsets = [7, 0], sizes = [1, 128], strides = [1, 1]} : vector<8x128xf32> to vector<1x128xf32>
    %cst_60 = arith.constant dense<0.000000e+00> : vector<1x128xf32>
    %212 = tpu.matmul %207, %40, %cst_60 {dimension_numbers = #tpu.dot_dimension_numbers<[1], [0], [0], [1], [0, 0, 1, 1], [], []>} : vector<1x32xf32>, vector<32x128xf32>, vector<1x128xf32> -> vector<1x128xf32>
    %213 = arith.addf %211, %212 : vector<1x128xf32>
    %214 = arith.negf %213 : vector<1x128xf32>
    %215 = math.exp %214 : vector<1x128xf32>
    %cst_61 = arith.constant 1.000000e+00 : f32
    %216 = vector.broadcast %cst_61 : f32 to vector<1x128xf32>
    %217 = arith.addf %216, %215 : vector<1x128xf32>
    %218 = arith.divf %216, %217 : vector<1x128xf32>
    %219 = vector.extract_strided_slice %218 {offsets = [0, 0], sizes = [1, 32], strides = [1, 1]} : vector<1x128xf32> to vector<1x32xf32>
    %220 = vector.extract_strided_slice %218 {offsets = [0, 32], sizes = [1, 32], strides = [1, 1]} : vector<1x128xf32> to vector<1x32xf32>
    %221 = vector.extract_strided_slice %218 {offsets = [0, 64], sizes = [1, 32], strides = [1, 1]} : vector<1x128xf32> to vector<1x32xf32>
    %cst_62 = arith.constant 2.000000e+00 : f32
    %222 = vector.broadcast %cst_62 : f32 to vector<1x32xf32>
    %223 = arith.mulf %222, %221 : vector<1x32xf32>
    %cst_63 = arith.constant 1.000000e+00 : f32
    %224 = vector.broadcast %cst_63 : f32 to vector<1x32xf32>
    %225 = arith.subf %223, %224 : vector<1x32xf32>
    %226 = vector.extract_strided_slice %218 {offsets = [0, 96], sizes = [1, 32], strides = [1, 1]} : vector<1x128xf32> to vector<1x32xf32>
    %227 = arith.mulf %220, %205 : vector<1x32xf32>
    %228 = arith.mulf %219, %225 : vector<1x32xf32>
    %229 = arith.addf %227, %228 : vector<1x32xf32>
    %230 = math.tanh %229 : vector<1x32xf32>
    %231 = arith.mulf %226, %230 : vector<1x32xf32>
    %cst_64 = arith.constant 0.000000e+00 : f32
    %232 = vector.broadcast %cst_64 : f32 to vector<1x32xf32>
    %233 = arith.maximumf %231, %232 : vector<1x32xf32>
    %c7 = arith.constant 7 : index
    %c0_65 = arith.constant 0 : index
    %234 = vector.load %arg6[%c7, %c0_65] : memref<8x32xf32, #tpu.memory_space<vmem>>, vector<1x32xf32>
    tpu.vector_store %arg6[%c7, %c0_65], %233 {strides = array<i32>} : memref<8x32xf32, #tpu.memory_space<vmem>>, vector<1x32xf32>,
    %c0_66 = arith.constant 0 : index
    %c0_67 = arith.constant 0 : index
    %235 = vector.load %arg6[%c0_66, %c0_67] : memref<8x32xf32, #tpu.memory_space<vmem>>, vector<8x32xf32>
    %c0_68 = arith.constant 0 : index
    %c0_69 = arith.constant 0 : index
    %236 = vector.load %arg1[%c0_68, %c0_69] : memref<8x32xf32, #tpu.memory_space<vmem>>, vector<8x32xf32>
    %237 = tpu.concatenate %236, %235 in 1 : vector<8x32xf32>, vector<8x32xf32> -> vector<8x64xf32>
    %c384 = arith.constant 384 : index
    %c0_70 = arith.constant 0 : index
    %238 = vector.load %arg2[%c384, %c0_70] : memref<472x64xf32, #tpu.memory_space<vmem>>, vector<64x64xf32>
    %cst_71 = arith.constant dense<0.000000e+00> : vector<8x64xf32>
    %239 = tpu.matmul %237, %238, %cst_71 {dimension_numbers = #tpu.dot_dimension_numbers<[1], [0], [0], [1], [0, 0, 1, 1], [], []>} : vector<8x64xf32>, vector<64x64xf32>, vector<8x64xf32> -> vector<8x64xf32>
    %c464 = arith.constant 464 : index
    %c0_72 = arith.constant 0 : index
    %240 = vector.load %arg2[%c464, %c0_72] : memref<472x64xf32, #tpu.memory_space<vmem>>, vector<1x64xf32>
    %241 = vector.broadcast %240 : vector<1x64xf32> to vector<8x64xf32>
    %242 = arith.addf %239, %241 : vector<8x64xf32>
    %243 = vector.extract_strided_slice %242 {offsets = [0, 0], sizes = [8, 32], strides = [1, 1]} : vector<8x64xf32> to vector<8x32xf32>
    %244 = arith.negf %243 : vector<8x32xf32>
    %245 = math.exp %244 : vector<8x32xf32>
    %cst_73 = arith.constant 1.000000e+00 : f32
    %246 = vector.broadcast %cst_73 : f32 to vector<8x32xf32>
    %247 = arith.addf %246, %245 : vector<8x32xf32>
    %248 = arith.divf %246, %247 : vector<8x32xf32>
    %249 = vector.extract_strided_slice %242 {offsets = [0, 32], sizes = [8, 32], strides = [1, 1]} : vector<8x64xf32> to vector<8x32xf32>
    %cst_74 = arith.constant 0.000000e+00 : f32
    %250 = vector.broadcast %cst_74 : f32 to vector<8x32xf32>
    %251 = arith.maximumf %249, %250 : vector<8x32xf32>
    %c0_75 = arith.constant 0 : index
    %c0_76 = arith.constant 0 : index
    %252 = vector.load %arg4[%c0_75, %c0_76] : memref<56x32xf32, #tpu.memory_space<vmem>>, vector<32x32xf32>
    %cst_77 = arith.constant dense<0.000000e+00> : vector<8x32xf32>
    %253 = tpu.matmul %251, %252, %cst_77 {dimension_numbers = #tpu.dot_dimension_numbers<[1], [0], [0], [1], [0, 0, 1, 1], [], []>} : vector<8x32xf32>, vector<32x32xf32>, vector<8x32xf32> -> vector<8x32xf32>
    %c32 = arith.constant 32 : index
    %c0_78 = arith.constant 0 : index
    %254 = vector.load %arg4[%c32, %c0_78] : memref<56x32xf32, #tpu.memory_space<vmem>>, vector<1x32xf32>
    %255 = vector.broadcast %254 : vector<1x32xf32> to vector<8x32xf32>
    %256 = arith.addf %253, %255 : vector<8x32xf32>
    %257 = arith.mulf %256, %248 : vector<8x32xf32>
    %cst_79 = arith.constant dense<0.000000e+00> : vector<32xf32>
    %258 = vector.multi_reduction <add>, %257, %cst_79 [0] : vector<8x32xf32> to vector<32xf32>
    %259 = vector.shape_cast %258 : vector<32xf32> to vector<1x32xf32>
    %cst_80 = arith.constant 8.000000e+00 : f32
    %260 = vector.broadcast %cst_80 : f32 to vector<1x32xf32>
    %261 = arith.divf %259, %260 : vector<1x32xf32>
    %262 = vector.broadcast %261 : vector<1x32xf32> to vector<8x32xf32>
    %263 = arith.addf %236, %262 : vector<8x32xf32>
    %cst_81 = arith.constant dense<0.000000e+00> : vector<8xf32>
    %264 = vector.multi_reduction <add>, %263, %cst_81 [1] : vector<8x32xf32> to vector<8xf32>
    %265 = vector.shape_cast %264 : vector<8xf32> to vector<8x1xf32>
    %cst_82 = arith.constant 3.200000e+01 : f32
    %266 = vector.broadcast %cst_82 : f32 to vector<8x1xf32>
    %267 = arith.divf %265, %266 : vector<8x1xf32>
    %268 = vector.broadcast %267 : vector<8x1xf32> to vector<8x32xf32>
    %269 = arith.subf %263, %268 : vector<8x32xf32>
    %270 = arith.mulf %269, %269 : vector<8x32xf32>
    %cst_83 = arith.constant dense<0.000000e+00> : vector<8xf32>
    %271 = vector.multi_reduction <add>, %270, %cst_83 [1] : vector<8x32xf32> to vector<8xf32>
    %272 = vector.shape_cast %271 : vector<8xf32> to vector<8x1xf32>
    %cst_84 = arith.constant 3.200000e+01 : f32
    %273 = vector.broadcast %cst_84 : f32 to vector<8x1xf32>
    %274 = arith.divf %272, %273 : vector<8x1xf32>
    %c40 = arith.constant 40 : index
    %c0_85 = arith.constant 0 : index
    %275 = vector.load %arg4[%c40, %c0_85] : memref<56x32xf32, #tpu.memory_space<vmem>>, vector<1x32xf32>
    %276 = vector.broadcast %267 : vector<8x1xf32> to vector<8x32xf32>
    %277 = arith.subf %263, %276 : vector<8x32xf32>
    %278 = vector.broadcast %275 : vector<1x32xf32> to vector<8x32xf32>
    %279 = arith.mulf %278, %277 : vector<8x32xf32>
    %cst_86 = arith.constant 9.99999997E-7 : f32
    %280 = vector.broadcast %cst_86 : f32 to vector<8x1xf32>
    %281 = arith.addf %274, %280 : vector<8x1xf32>
    %282 = math.rsqrt %281 : vector<8x1xf32>
    %283 = vector.broadcast %282 : vector<8x1xf32> to vector<8x32xf32>
    %284 = arith.mulf %279, %283 : vector<8x32xf32>
    %c48 = arith.constant 48 : index
    %c0_87 = arith.constant 0 : index
    %285 = vector.load %arg4[%c48, %c0_87] : memref<56x32xf32, #tpu.memory_space<vmem>>, vector<1x32xf32>
    %286 = vector.broadcast %285 : vector<1x32xf32> to vector<8x32xf32>
    %287 = arith.addf %284, %286 : vector<8x32xf32>
    %c0_88 = arith.constant 0 : index
    %c0_89 = arith.constant 0 : index
    %288 = vector.load %arg5[%c0_88, %c0_89] : memref<8x32xf32, #tpu.memory_space<vmem>>, vector<8x32xf32>
    tpu.vector_store %arg5[%c0_88, %c0_89], %287 {strides = array<i32>} : memref<8x32xf32, #tpu.memory_space<vmem>>, vector<8x32xf32>,
    return
  }
}

</mosaic_0001>

<bundles_post_ra>
// kernel: encoder_forward.1
= control target key start
LH: loop header
LB: loop body
LE: loop exit
PB: predicated region body
PF: predicated region fallthrough
CT: control target
= control target key end

     0   :  { %vm25_vm0 = vcmask 1046528   ;;  %v1892_v5 = vmov 0.0   ;;  %vm35_vm1 = vcmask 1045504   ;;  %vm39_vm2 = vcmask 523264   ;;  %s1893_s27 = smov 64   ;;  %s2496_s0 = inlined_call_operand.vmem [shape: f32[16,64], index: 0, kind: input, shape index: {}]   ;;  %s2497_s1 = inlined_call_operand.vmem [shape: f32[8,32], index: 1, kind: input, shape index: {}]   ;;  %s2498_s2 = inlined_call_operand.vmem [shape: f32[472,64], index: 2, kind: input, shape index: {}]   ;;  %s2499_s3 = inlined_call_operand.vmem [shape: f32[176,128], index: 3, kind: input, shape index: {}]   ;;  %s2500_s4 = inlined_call_operand.vmem [shape: f32[56,32], index: 4, kind: input, shape index: {}]   ;;  %s2501_s5 = inlined_call_operand.hbm [shape: f32[8,32], index: 5, kind: output, shape index: {}]  }
   0x1   :  { %v1931_v0 = vld [vmem:[%s2496_s0] sm:$0xff]  ;;  %v1936_v1 = vld [vmem:[%s2496_s0 + $0x8] sm:$0xff]  ;;  %v57_v2 = vld [vmem:[%s2498_s2 + $0x78] sm:$0xff]  ;;  %75 = vmatprep.subr.mxu0 %v1892_v5  ;;  %211 = vmatprep.subr.mxu1 %v1892_v5 }
   0x2   :  { %v26_v3 = vrot.slane %v1931_v0, 1  ;;  %v27_v4 = vrot.slane %v1936_v1, 1  ;;  %v56_v6 = vld [vmem:[%s2498_s2 + $0x70] sm:$0xff]  ;;  %76 = vmatpush1.msra.mxu0 %v57_v2  ;;  %v36_v7 = vrot.slane %v1931_v0, 2  ;;  %v37_v8 = vrot.slane %v1936_v1, 2  ;;  %v55_v10 = vld [vmem:[%s2498_s2 + $0x68] sm:$0xff] }
   0x3   :  { %77 = vmatprep.subr.mxu0 %v1892_v5  ;;  %v54_v12 = vld [vmem:[%s2498_s2 + $0x60] sm:$0xff]  ;;  %v53_v13 = vld [vmem:[%s2498_s2 + $0x58] sm:$0xff]  ;;  %v52_v14 = vld [vmem:[%s2498_s2 + $0x50] sm:$0xff] }
   0x4   :  { %v28_v9 = vsel %vm25_vm0, %v26_v3, %v27_v4  ;;  %78 = vmatpush1.msra.mxu0 %v56_v6  ;;  %v38_v11 = vsel %vm35_vm1, %v36_v7, %v37_v8 }
   0x5   :  { %29 = vrot.lane.b32.xlu0 %v28_v9, %s1893_s27  ;;  %79 = vmatprep.subr.mxu0 %v1892_v5 }
   0x6   :  { %1550 = vmatprep.mubr.msk.f32.mxu0 %vm39_vm2, %v38_v11  ;;  %80 = vmatpush1.msra.mxu0 %v55_v10 }
   0x7   :  { %81 = vmatprep.subr.mxu0 %v1892_v5 }
   0x8   :  { %82 = vmatpush1.msra.mxu0 %v54_v12 }
   0x9   :  { %31 = vrot.lane.b32.xlu0 %v27_v4, %s1893_s27  ;;  %83 = vmatprep.subr.mxu0 %v1892_v5 }
   0xa   :  { %10 = vsyncpa [#allocation4], 0  ;;  %84 = vmatpush1.msra.mxu0 %v53_v13  ;;  %v51_v15 = vld [vmem:[%s2498_s2 + $0x48] sm:$0xff]  ;;  %v50_v16 = vld [vmem:[%s2498_s2 + $0x40] sm:$0xff]  ;;  %vm172_vm3 = vcmask 1043456   ;;  %vm1894_vm4 = vmmov 0  }
   0xb   :  { %85 = vmatprep.subr.mxu0 %v1892_v5  ;;  %v49_v17 = vld [vmem:[%s2498_s2 + $0x38] sm:$0xff]  ;;  %v48_v18 = vld [vmem:[%s2498_s2 + $0x30] sm:$0xff]  ;;  %v47_v19 = vld [vmem:[%s2498_s2 + $0x28] sm:$0xff]  ;;  %s1895_s16 = smov 32   ;;  %vm402_vm5 = vcmask 261120   ;;  %vm507_vm6 = vcmask 253952  }
   0xc   :  { %86 = vmatpush1.msra.mxu0 %v52_v14  ;;  %v46_v20 = vld [vmem:[%s2498_s2 + $0x20] sm:$0xff]  ;;  %v45_v21 = vld [vmem:[%s2498_s2 + $0x18] sm:$0xff]  ;;  %v44_v22 = vld [vmem:[%s2498_s2 + $0x10] sm:$0xff]  ;;  %vm736_vm7 = vcmask 256002   ;;  %vm966_vm8 = vcmask 258052   ;;  %vm1196_vm9 = vcmask 260102  }
   0xd   :  { %87 = vmatprep.subr.mxu0 %v1892_v5  ;;  %v43_v23 = vld [vmem:[%s2498_s2 + $0x8] sm:$0xff]  ;;  %v42_v24 = vld [vmem:[%s2498_s2] sm:$0xff]  ;;  %v65_v25 = vld [vmem:[%s2498_s2 + $0xb8] sm:$0xff]  ;;  %vm621_vm10 = vcmask 254977   ;;  %vm851_vm11 = vcmask 257027   ;;  %vm1081_vm12 = vcmask 259077  }
   0xe   :  { %88 = vmatpush1.msra.mxu0 %v51_v15  ;;  %v64_v26 = vld [vmem:[%s2498_s2 + $0xb0] sm:$0xff]  ;;  %v63_v27 = vld [vmem:[%s2498_s2 + $0xa8] sm:$0xff]  ;;  %v62_v28 = vld [vmem:[%s2498_s2 + $0xa0] sm:$0xff]  ;;  %vm1311_vm13 = vcmask 261127   ;;  %s1897_s21 = smov [#allocation3]  }
   0xf   :  { %89 = vmatprep.subr.mxu0 %v1892_v5  ;;  %v61_v29 = vld [vmem:[%s2498_s2 + $0x98] sm:$0xff]  ;;  %v60_v30 = vld [vmem:[%s2498_s2 + $0x90] sm:$0xff]  ;;  %v59_v31 = vld [vmem:[%s2498_s2 + $0x88] sm:$0xff]  ;;  %s1541_s22 = sshll.u32 %s1897_s21, 4  ;;  %s1542_s22 = int_to_ptr.vmem [resolvable:$true] %s1541_s22 }
  0x10   :  { %90 = vmatpush1.msra.mxu0 %v50_v16  ;;  %v58_v32 = vld [vmem:[%s2498_s2 + $0x80] sm:$0xff]  ;;  %v193_v37 = vld [vmem:[%s2498_s2 + $0x138] sm:$0xff]  ;;  %v192_v38 = vld [vmem:[%s2498_s2 + $0x130] sm:$0xff]  ;;  %s1870_s23 = scalar_lea.vmem %s1542_s22, 128  ;;  %p1875_p1 = scmp.lt.s32.totalorder %s1542_s22, %s1542_s22 }
  0x11   :  { %91 = vmatprep.subr.mxu0 %v1892_v5  ;;  %212 = vmatpush1.msra.mxu1 %v193_v37  ;;  %v191_v39 = vld [vmem:[%s2498_s2 + $0x128] sm:$0xff]  ;;  %v190_v40 = vld [vmem:[%s2498_s2 + $0x120] sm:$0xff]  ;;  %v189_v41 = vld [vmem:[%s2498_s2 + $0x118] sm:$0xff]  ;;  %p1871_p0 = scmp.ne.s32.totalorder %s1542_s22, %s1870_s23  ;;  %p1876_p2 = scmp.lt.s32.totalorder %s1870_s23, %s1870_s23 }
  0x12   :  { %92 = vmatpush1.msra.mxu0 %v49_v17  ;;  %213 = vmatprep.subr.mxu1 %v1892_v5  ;;  %v188_v42 = vld [vmem:[%s2498_s2 + $0x110] sm:$0xff]  ;;  %v187_v43 = vld [vmem:[%s2498_s2 + $0x108] sm:$0xff]  ;;  %v186_v44 = vld [vmem:[%s2498_s2 + $0x100] sm:$0xff] }
  0x13   :  { %93 = vmatprep.subr.mxu0 %v1892_v5  ;;  %214 = vmatpush1.msra.mxu1 %v192_v38  ;;  %v185_v45 = vld [vmem:[%s2498_s2 + $0xf8] sm:$0xff]  ;;  %v184_v46 = vld [vmem:[%s2498_s2 + $0xf0] sm:$0xff]  ;;  %v183_v47 = vld [vmem:[%s2498_s2 + $0xe8] sm:$0xff]  ;;  %p1877_p3 = por %p1876_p2, %p1875_p1 }
  0x14   :  { %94 = vmatpush1.msra.mxu0 %v48_v18  ;;  %215 = vmatprep.subr.mxu1 %v1892_v5  ;;  %v182_v48 = vld [vmem:[%s2498_s2 + $0xe0] sm:$0xff]  ;;  %v181_v49 = vld [vmem:[%s2498_s2 + $0xd8] sm:$0xff]  ;;  %v180_v50 = vld [vmem:[%s2498_s2 + $0xd0] sm:$0xff] }
  0x15   :  { %95 = vmatprep.subr.mxu0 %v1892_v5  ;;  %216 = vmatpush1.msra.mxu1 %v191_v39  ;;  %v179_v51 = vld [vmem:[%s2498_s2 + $0xc8] sm:$0xff]  ;;  %v178_v52 = vld [vmem:[%s2498_s2 + $0xc0] sm:$0xff]  ;;  %v201_v53 = vld [vmem:[%s2498_s2 + $0x178] sm:$0xff]  ;;  %p1878_p4 = pnand %p1877_p3, %p1871_p0 }
  0x16   :  { %96 = vmatpush1.msra.mxu0 %v47_v19  ;;  %217 = vmatprep.subr.mxu1 %v1892_v5  ;;  %v200_v54 = vld [vmem:[%s2498_s2 + $0x170] sm:$0xff]  ;;  %v199_v55 = vld [vmem:[%s2498_s2 + $0x168] sm:$0xff]  ;;  %v198_v56 = vld [vmem:[%s2498_s2 + $0x160] sm:$0xff] }
  0x17   :  { %97 = vmatprep.subr.mxu0 %v1892_v5  ;;  %218 = vmatpush1.msra.mxu1 %v190_v40  ;;  %v197_v57 = vld [vmem:[%s2498_s2 + $0x158] sm:$0xff]  ;;  %v196_v58 = vld [vmem:[%s2498_s2 + $0x150] sm:$0xff]  ;;  %v195_v59 = vld [vmem:[%s2498_s2 + $0x148] sm:$0xff] }
  0x18   :  { %98 = vmatpush1.msra.mxu0 %v46_v20  ;;  %219 = vmatprep.subr.mxu1 %v1892_v5  ;;  %v1549_v60 = vld [vmem:[%s2498_s2 + $0x1c0] ss:$0 sm:$0xff]  ;;  %v309_v40 = vld [vmem:[%s2499_s3 + $0x10] sm:$0xff] }
  0x19   :  { %99 = vmatprep.subr.mxu0 %v1892_v5  ;;  %220 = vmatpush1.msra.mxu1 %v189_v41  ;;  %v2229_v41 = vld [vmem:[%s2499_s3 + $0x90] sm:$0xff] }
  0x1a   :  { %100 = vmatpush1.msra.mxu0 %v45_v21  ;;  %221 = vmatprep.subr.mxu1 %v1892_v5 }
  0x1b   :  { %101 = vmatprep.subr.mxu0 %v1892_v5  ;;  %222 = vmatpush1.msra.mxu1 %v188_v42 }
  0x1c   :  { %102 = vmatpush1.msra.mxu0 %v44_v22  ;;  %223 = vmatprep.subr.mxu1 %v1892_v5  ;;  %v322_v22 = vld [vmem:[%s2499_s3 + $0x78] sm:$0xff] }
  0x1d   :  { %103 = vmatprep.subr.mxu0 %v1892_v5  ;;  %224 = vmatpush1.msra.mxu1 %v187_v43  ;;  %v308_v43 = vld [vmem:[%s2499_s3 + $0x8] sm:$0xff] }
  0x1e   :  { %104 = vmatpush1.msra.mxu0 %v43_v23  ;;  %225 = vmatprep.subr.mxu1 %v1892_v5  ;;  %v321_v23 = vld [vmem:[%s2499_s3 + $0x70] sm:$0xff] }
  0x1f   :  { %105 = vmatprep.subr.mxu0 %v1892_v5  ;;  %226 = vmatpush1.msra.mxu1 %v186_v44  ;;  %v2240_v44 = vld [vmem:[%s2499_s3 + $0x88] sm:$0xff] }
  0x20   :  { %106 = vmatpush1.msra.mxu0 %v42_v24  ;;  %227 = vmatprep.subr.mxu1 %v1892_v5  ;;  %v320_v24 = vld [vmem:[%s2499_s3 + $0x68] sm:$0xff] }
  0x21   :  { %123 = vmatprep.subr.mxu0 %v1892_v5  ;;  %228 = vmatpush1.msra.mxu1 %v185_v45 }
  0x22   :  { %124 = vmatpush2.msra.mxu0 %v65_v25  ;;  %229 = vmatprep.subr.mxu1 %v1892_v5  ;;  %v319_v25 = vld [vmem:[%s2499_s3 + $0x60] sm:$0xff] }
  0x23   :  { %125 = vmatprep.subr.mxu0 %v1892_v5  ;;  %230 = vmatpush1.msra.mxu1 %v184_v46 }
  0x24   :  { %126 = vmatpush2.msra.mxu0 %v64_v26  ;;  %231 = vmatprep.subr.mxu1 %v1892_v5  ;;  %v2178_v26 = vld [vmem:[%s2499_s3 + $0x98] sm:$0xff] }
  0x25   :  { %127 = vmatprep.subr.mxu0 %v1892_v5  ;;  %232 = vmatpush1.msra.mxu1 %v183_v47 }
  0x26   :  { %128 = vmatpush2.msra.mxu0 %v63_v27  ;;  %233 = vmatprep.subr.mxu1 %v1892_v5  ;;  %v318_v27 = vld [vmem:[%s2499_s3 + $0x58] sm:$0xff] }
  0x27   :  { %129 = vmatprep.subr.mxu0 %v1892_v5  ;;  %234 = vmatpush1.msra.mxu1 %v182_v48  ;;  %v307_v48 = vld [vmem:[%s2499_s3] sm:$0xff] }
  0x28   :  { %130 = vmatpush2.msra.mxu0 %v62_v28  ;;  %235 = vmatprep.subr.mxu1 %v1892_v5  ;;  %v317_v28 = vld [vmem:[%s2499_s3 + $0x50] sm:$0xff] }
  0x29   :  { %131 = vmatprep.subr.mxu0 %v1892_v5  ;;  %236 = vmatpush1.msra.mxu1 %v181_v49  ;;  %v2251_v49 = vld [vmem:[%s2499_s3 + $0x80] sm:$0xff] }
  0x2a   :  { %132 = vmatpush2.msra.mxu0 %v61_v29  ;;  %237 = vmatprep.subr.mxu1 %v1892_v5  ;;  %v316_v29 = vld [vmem:[%s2499_s3 + $0x48] sm:$0xff] }
  0x2b   :  { %133 = vmatprep.subr.mxu0 %v1892_v5  ;;  %238 = vmatpush1.msra.mxu1 %v180_v50 }
  0x2c   :  { %134 = vmatpush2.msra.mxu0 %v60_v30  ;;  %239 = vmatprep.subr.mxu1 %v1892_v5  ;;  %v315_v30 = vld [vmem:[%s2499_s3 + $0x40] sm:$0xff] }
  0x2d   :  { %135 = vmatprep.subr.mxu0 %v1892_v5  ;;  %240 = vmatpush1.msra.mxu1 %v179_v51 }
  0x2e   :  { %136 = vmatpush2.msra.mxu0 %v59_v31  ;;  %241 = vmatprep.subr.mxu1 %v1892_v5  ;;  %v314_v31 = vld [vmem:[%s2499_s3 + $0x38] sm:$0xff] }
  0x2f   :  { %137 = vmatprep.subr.mxu0 %v1892_v5  ;;  %242 = vmatpush1.msra.mxu1 %v178_v52 }
  0x30   :  { %138 = vmatpush2.msra.mxu0 %v58_v32  ;;  %259 = vmatprep.subr.mxu1 %v1892_v5  ;;  %v313_v32 = vld [vmem:[%s2499_s3 + $0x30] sm:$0xff] }
  0x31   :  { %1657 = vmatprep.subr.mxu0 %v1892_v5  ;;  %260 = vmatpush2.msra.mxu1 %v201_v53 }
  0x32   :  { %261 = vmatprep.subr.mxu1 %v1892_v5 }
  0x33   :  { %262 = vmatpush2.msra.mxu1 %v200_v54 }
  0x34   :  { %263 = vmatprep.subr.mxu1 %v1892_v5 }
  0x35   :  { %264 = vmatpush2.msra.mxu1 %v199_v55 }
  0x36   :  { %265 = vmatprep.subr.mxu1 %v1892_v5 }
  0x37   :  { %266 = vmatpush2.msra.mxu1 %v198_v56  ;;  %v302_v56 = vlaneseq }
  0x38   :  { %267 = vmatprep.subr.mxu1 %v1892_v5 }
  0x39   :  { %268 = vmatpush2.msra.mxu1 %v197_v57  ;;  %v303_v57 = vshrl.u32 %v302_v56, 7 }
  0x3a   :  { %269 = vmatprep.subr.mxu1 %v1892_v5 }
  0x3b   :  { %270 = vmatpush2.msra.mxu1 %v196_v58  ;;  %v304_v58 = vsub.s32 0, %v303_v57 }
  0x3c   :  { %271 = vmatprep.subr.mxu1 %v1892_v5 }
  0x3d   :  { %272 = vmatpush2.msra.mxu1 %v195_v59 }
  0x3e   :  { %273 = vmatprep.subr.mxu1 %v1892_v5 }
  0x77   :  { %v30_v33 = vpop.permute.xlu0 %29 }
  0x78   :  { %v40_v34 = vsel %vm39_vm2, %v1931_v0, %v30_v33  ;;  %v194_v0 = vld [vmem:[%s2498_s2 + $0x140] sm:$0xff]  ;;  %v312_v33 = vld [vmem:[%s2499_s3 + $0x28] sm:$0xff] }
  0x79   :  { %140 = vmatmul.mubr.f32.vlgmr.msra.gmra.mxu0 %v40_v34  ;;  %274 = vmatpush2.msra.mxu1 %v194_v0  ;;  %v311_v34 = vld [vmem:[%s2499_s3 + $0x20] sm:$0xff] }
  0x7a   :  { %1551 = vmatprep.mubr.msk.f32.mxu0 %vm39_vm2, %v37_v8  ;;  %1692 = vmatprep.subr.mxu1 %v1892_v5 }
  0x7b   :  { %v32_v35 = vpop.permute.xlu0 %31  ;;  %1658 = vmatpush3.msra.mxu0 %v322_v22 }
  0x7c   :  { %v41_v36 = vsel %vm39_vm2, %v1936_v1, %v32_v35  ;;  %1659 = vmatprep.subr.mxu0 %v1892_v5  ;;  %v310_v35 = vld [vmem:[%s2499_s3 + $0x18] sm:$0xff] }
  0x7d   :  { %145 = vmatmul.mubr.f32.gmra.mxu0 %v41_v36  ;;  %v1552_v36 = vld [vmem:[%s2498_s2 + $0x1c8] ss:$0 sm:$0xff] }
  0x7e   :  { %1660 = vmatpush3.msra.mxu0 %v321_v23  ;;  %1689 = vmatprep.mubr.msk.f32.mxu0 %vm1894_vm4, %v1892_v5 }
  0x7f   :  { %1661 = vmatprep.subr.mxu0 %v1892_v5 }
  0x80   :  { %1662 = vmatpush3.msra.mxu0 %v320_v24 }
  0x81   :  { %1663 = vmatprep.subr.mxu0 %v1892_v5 }
  0x82   :  { %1664 = vmatpush3.msra.mxu0 %v319_v25 }
  0x83   :  { %1665 = vmatprep.subr.mxu0 %v1892_v5 }
  0x84   :  { %1666 = vmatpush3.msra.mxu0 %v318_v27 }
  0x85   :  { %1667 = vmatprep.subr.mxu0 %v1892_v5 }
  0x86   :  { %1668 = vmatpush3.msra.mxu0 %v317_v28 }
  0x87   :  { %1669 = vmatprep.subr.mxu0 %v1892_v5 }
  0x88   :  { %1670 = vmatpush3.msra.mxu0 %v316_v29 }
  0x89   :  { %1671 = vmatprep.subr.mxu0 %v1892_v5 }
  0x8a   :  { %1672 = vmatpush3.msra.mxu0 %v315_v30 }
  0x8b   :  { %1673 = vmatprep.subr.mxu0 %v1892_v5 }
  0x8c   :  { %1674 = vmatpush3.msra.mxu0 %v314_v31 }
  0x8d   :  { %1675 = vmatprep.subr.mxu0 %v1892_v5 }
  0x8e   :  { %1676 = vmatpush3.msra.mxu0 %v313_v32 }
  0x8f   :  { %1677 = vmatprep.subr.mxu0 %v1892_v5 }
  0x90   :  { %1678 = vmatpush3.msra.mxu0 %v312_v33 }
  0x91   :  { %1679 = vmatprep.subr.mxu0 %v1892_v5 }
  0x92   :  { %1680 = vmatpush3.msra.mxu0 %v311_v34 }
  0x93   :  { %1681 = vmatprep.subr.mxu0 %v1892_v5 }
  0x94   :  { %1682 = vmatpush3.msra.mxu0 %v310_v35 }
  0x95   :  { %1683 = vmatprep.subr.mxu0 %v1892_v5 }
  0x96   :  { %1684 = vmatpush3.msra.mxu0 %v309_v40 }
  0x97   :  { %1685 = vmatprep.subr.mxu0 %v1892_v5 }
  0x98   :  { %1686 = vmatpush3.msra.mxu0 %v308_v43 }
  0x99   :  { %1687 = vmatprep.subr.mxu0 %v1892_v5 }
  0x9a   :  { %1688 = vmatpush3.msra.mxu0 %v307_v48 }
  0x9b   :  { %1736 = vmatprep.subr.mxu0 %v1892_v5 }
 0x139   :  { %v141_v61 = vpop.f32.mrf.mxu0 }
 0x13a   :  { %v142_v62 = vadd.f32 %v1549_v60, %v141_v61 }
 0x13b   :  { %v143_v63 = vpop.f32.mrf.mxu0 }
 0x13c   :  { %v150_v2 = vmax.f32 %v142_v62, 0.0 }
 0x13d   :  { %v146_v1 = vpop.f32.mrf.mxu0 }
 0x13e   :  { %v147_v3 = vadd.f32 %v1549_v60, %v146_v1  ;;  %v154_v7 = vrot.slane %v150_v2, 1  ;;  %v301_v60 = vld [vmem:[%s2499_s3 + $0xa0] sm:$0xff] }
 0x13f   :  { %v148_v4 = vpop.f32.mrf.mxu0 }
 0x140   :  { %v151_v6 = vmax.f32 %v147_v3, 0.0 }
 0x142   :  { %v155_v8 = vrot.slane %v151_v6, 1 }
 0x144   :  { %v156_v9 = vsel %vm25_vm0, %v154_v7, %v155_v8  ;;  %v160_v10 = vmax.f32 %v151_v6, %v155_v8 }
 0x145   :  { %v159_v11 = vmax.f32 %v150_v2, %v156_v9  ;;  %v1555_v2 = vld [vmem:[%s2499_s3 + $0xa8] ss:$0 sm:$0xff]  ;;  %s1896_s3 = smov 96  }
 0x146   :  { %v174_v12 = vrot.slane %v160_v10, 4  ;;  %v164_v13 = vrot.slane %v160_v10, 2 }
 0x147   :  { %v173_v14 = vrot.slane %v159_v11, 4  ;;  %v163_v15 = vrot.slane %v159_v11, 2 }
 0x149   :  { %v175_v16 = vsel %vm172_vm3, %v173_v14, %v174_v12  ;;  %v165_v17 = vsel %vm35_vm1, %v163_v15, %v164_v13 }
 0x14a   :  { %1553 = vmatprep.mubr.msk.f32.mxu1 %vm39_vm2, %v175_v16  ;;  %166 = vrot.lane.b32.xlu1 %v165_v17, %s1893_s27 }
 0x14e   :  { %168 = vrot.lane.b32.xlu1 %v164_v13, %s1893_s27 }
 0x1bc   :  { %v167_v18 = vpop.permute.xlu1 %166 }
 0x1bd   :  { %v176_v19 = vsel %vm39_vm2, %v159_v11, %v167_v18 }
 0x1be   :  { %276 = vmatmul.mubr.f32.vlgmr.msra.gmra.mxu1 %v176_v19 }
 0x1bf   :  { %1554 = vmatprep.mubr.msk.f32.mxu1 %vm39_vm2, %v174_v12  ;;  %1693 = vmatpush3.msra.mxu1 %v2178_v26 }
 0x1c0   :  { %v169_v20 = vpop.permute.xlu1 %168  ;;  %1694 = vmatprep.subr.mxu1 %v1892_v5 }
 0x1c1   :  { %v177_v21 = vsel %vm39_vm2, %v160_v10, %v169_v20  ;;  %1695 = vmatpush3.msra.mxu1 %v2229_v41 }
 0x1c2   :  { %281 = vmatmul.mubr.f32.gmra.mxu1 %v177_v21  ;;  %1696 = vmatprep.subr.mxu1 %v1892_v5 }
 0x1c3   :  { %1697 = vmatpush3.msra.mxu1 %v2240_v44  ;;  %1700 = vmatprep.mubr.msk.f32.mxu1 %vm1894_vm4, %v1892_v5 }
 0x1c4   :  { %1698 = vmatprep.subr.mxu1 %v1892_v5 }
 0x1c5   :  { %1699 = vmatpush3.msra.mxu1 %v2251_v49 }
 0x1c6   :  { %1701 = vmatmul.mubr.f32.vlgmr.msra.gmra.mxu1 %v1892_v5  ;;  %1703 = vmatprep.subr.mxu1 %v1892_v5 }
 0x1c7   :  { %1704 = vmatpush3.msra.mxu1 %v2178_v26  ;;  %1711 = vmatprep.mubr.msk.f32.mxu1 %vm1894_vm4, %v1892_v5 }
 0x1c8   :  { %1705 = vmatprep.subr.mxu1 %v1892_v5 }
 0x1c9   :  { %1706 = vmatpush3.msra.mxu1 %v2229_v41 }
 0x1ca   :  { %1707 = vmatprep.subr.mxu1 %v1892_v5 }
 0x1cb   :  { %1708 = vmatpush3.msra.mxu1 %v2240_v44 }
 0x1cc   :  { %1709 = vmatprep.subr.mxu1 %v1892_v5 }
 0x1cd   :  { %1710 = vmatpush3.msra.mxu1 %v2251_v49 }
 0x1ce   :  { %1714 = vmatprep.subr.mxu1 %v1892_v5 }
 0x27e   :  { %v277_v37 = vpop.f32.mrf.mxu1 }
 0x27f   :  { %v278_v38 = vadd.f32 %v1552_v36, %v277_v37 }
 0x280   :  { %v279_v39 = vpop.f32.mrf.mxu1 }
 0x281   :  { %v286_v45 = vmax.f32 %v278_v38, 0.0 }
 0x282   :  { %v282_v42 = vpop.f32.mrf.mxu1 }
 0x283   :  { %v283_v46 = vadd.f32 %v1552_v36, %v282_v42  ;;  %v290_v51 = vrot.slane %v286_v45, 2 }
 0x284   :  { %v284_v47 = vpop.f32.mrf.mxu1 }
 0x285   :  { %v287_v50 = vmax.f32 %v283_v46, 0.0 }
 0x286   :  { %v472_v0 = vpop.f32.mrf.mxu1 }
 0x287   :  { %v291_v52 = vrot.slane %v287_v50, 2 }
 0x288   :  { %v1702_v1 = vpop.f32.mrf.mxu1 }
 0x289   :  { %v292_v53 = vsel %vm35_vm1, %v290_v51, %v291_v52 }
 0x28a   :  { %v294_v54 = vmax.f32 %v286_v45, %v292_v53 }
 0x28c   :  { %v296_v55 = vrot.slane %v294_v54, 4 }
 0x28e   :  { %297 = vrot.lane.b32.xlu0 %v296_v55, %s1893_s27 }
 0x300   :  { %v298_v59 = vpop.permute.xlu0 %297 }
 0x301   :  { %v300_v61 = vsel %vm39_vm2, %v294_v54, %v298_v59 }
 0x302   :  { %v305_v62 = vrot.slane %v300_v61, %v304_v58 }
 0x304   :  { %v306_v63 = vmul.f32 %v305_v62, %v301_v60 }
 0x306   :  { %1690 = vmatmul.mubr.f32.vlgmr.msra.gmra.mxu0 %v306_v63 }
 0x307   :  { %1737 = vmatpush3.msra.mxu0 %v2178_v26  ;;  %1744 = vmatprep.mubr.msk.f32.mxu0 %vm1894_vm4, %v1892_v5 }
 0x308   :  { %1738 = vmatprep.subr.mxu0 %v1892_v5 }
 0x309   :  { %1739 = vmatpush3.msra.mxu0 %v2229_v41 }
 0x30a   :  { %1740 = vmatprep.subr.mxu0 %v1892_v5 }
 0x30b   :  { %1741 = vmatpush3.msra.mxu0 %v2240_v44 }
 0x30c   :  { %1742 = vmatprep.subr.mxu0 %v1892_v5 }
 0x30d   :  { %1743 = vmatpush3.msra.mxu0 %v2251_v49 }
 0x30e   :  { %1758 = vmatprep.subr.mxu0 %v1892_v5 }
 0x3c6   :  { %v394_v3 = vpop.f32.mrf.mxu0 }
 0x3c7   :  { %v2290_v4 = vadd.f32 %v1555_v2, %v394_v3 }
 0x3c8   :  { %v1691_v6 = vpop.f32.mrf.mxu0 }
 0x3c9   :  { %v476_v7 = vadd.f32 %v472_v0, %v2290_v4 }
 0x3cb   :  { %v1556_v8 = vmul.f32 -1.442695, %v476_v7 }
 0x3cd   :  { %1816 = vpow2.f32 %v1556_v8 }
 0x3da   :  { %v1817_v9 = vpop.eup %1816 }
 0x3db   :  { %v480_v10 = vadd.f32 1.0, %v1817_v9 }
 0x3dd   :  { %1818 = vrcp.f32 %v480_v10 }
 0x3ea   :  { %v1819_v11 = vpop.eup %1818 }
 0x3eb   :  { %v483_v12 = vmul.f32 2.0, %v1819_v11  ;;  %v485_v16 = vmul.f32 0.0, %v1819_v11 }
 0x3ed   :  { %v1557_v13 = vadd.f32 -1.0, %v483_v12 }
 0x3ef   :  { %487 = vrot.lane.b32.xlu1 %v1557_v13, %s1893_s27 }
 0x461   :  { %v488_v14 = vpop.permute.xlu1 %487 }
 0x462   :  { %v490_v15 = vmul.f32 %v1819_v11, %v488_v14 }
 0x464   :  { %492 = vrot.lane.b32.xlu0 %v490_v15, %s1895_s16 }
 0x4d6   :  { %v493_v17 = vpop.permute.xlu0 %492 }
 0x4d7   :  { %v495_v18 = vadd.f32 %v493_v17, %v485_v16 }
 0x4d9   :  { %1820 = vtanh.f32 %v495_v18  ;;  %v597_v36 = vrot.slane %v495_v18, 7 }
 0x4e6   :  { %v1821_v19 = vpop.eup %1820 }
 0x4e7   :  { %498 = vrot.lane.b32.xlu1 %v1821_v19, %s1893_s27 }
 0x559   :  { %v499_v20 = vpop.permute.xlu1 %498 }
 0x55a   :  { %v2296_v21 = vmul.f32 %v1819_v11, %v499_v20 }
 0x55c   :  { %510 = vrot.lane.b32.xlu0 %v2296_v21, %s1895_s16 }
 0x5ce   :  { %v511_v22 = vpop.permute.xlu0 %510 }
 0x5cf   :  { %1712 = vmatmul.mubr.msk.f32.vlgmr.msra.gmra.mxu1 %vm402_vm5, %v511_v22 }
 0x5d0   :  { %1715 = vmatpush3.msra.mxu1 %v2178_v26  ;;  %1722 = vmatprep.mubr.msk.f32.mxu1 %vm1894_vm4, %v1892_v5 }
 0x5d1   :  { %1716 = vmatprep.subr.mxu1 %v1892_v5 }
 0x5d2   :  { %1717 = vmatpush3.msra.mxu1 %v2229_v41 }
 0x5d3   :  { %1718 = vmatprep.subr.mxu1 %v1892_v5 }
 0x5d4   :  { %1719 = vmatpush3.msra.mxu1 %v2240_v44 }
 0x5d5   :  { %1720 = vmatprep.subr.mxu1 %v1892_v5 }
 0x5d6   :  { %1721 = vmatpush3.msra.mxu1 %v2251_v49 }
 0x5d7   :  { %1725 = vmatprep.subr.mxu1 %v1892_v5 }
 0x68f   :  { %v580_v23 = vpop.f32.mrf.mxu1 }
 0x690   :  { %v585_v24 = vrot.slane %v580_v23, 7 }
 0x691   :  { %v1713_v25 = vpop.f32.mrf.mxu1 }
 0x692   :  { %v587_v27 = vadd.f32 %v585_v24, %v2290_v4 }
 0x694   :  { %v1559_v28 = vmul.f32 -1.442695, %v587_v27 }
 0x696   :  { %1822 = vpow2.f32 %v1559_v28 }
 0x6a3   :  { %v1823_v29 = vpop.eup %1822 }
 0x6a4   :  { %v591_v30 = vadd.f32 1.0, %v1823_v29 }
 0x6a6   :  { %1824 = vrcp.f32 %v591_v30 }
 0x6b3   :  { %v1825_v31 = vpop.eup %1824 }
 0x6b4   :  { %v594_v32 = vmul.f32 2.0, %v1825_v31  ;;  %v599_v37 = vmul.f32 %v1825_v31, %v597_v36 }
 0x6b6   :  { %v1560_v33 = vadd.f32 -1.0, %v594_v32 }
 0x6b8   :  { %601 = vrot.lane.b32.xlu1 %v1560_v33, %s1893_s27 }
 0x72a   :  { %v602_v34 = vpop.permute.xlu1 %601 }
 0x72b   :  { %v604_v35 = vmul.f32 %v1825_v31, %v602_v34 }
 0x72d   :  { %606 = vrot.lane.b32.xlu0 %v604_v35, %s1895_s16 }
 0x79f   :  { %v607_v38 = vpop.permute.xlu0 %606 }
 0x7a0   :  { %v609_v39 = vadd.f32 %v607_v38, %v599_v37 }
 0x7a2   :  { %1826 = vtanh.f32 %v609_v39  ;;  %v712_v60 = vrot.slane %v609_v39, 7 }
 0x7af   :  { %v1827_v40 = vpop.eup %1826 }
 0x7b0   :  { %612 = vrot.lane.b32.xlu1 %v1827_v40, %s1893_s27 }
 0x822   :  { %v613_v42 = vpop.permute.xlu1 %612 }
 0x823   :  { %v2315_v43 = vmul.f32 %v1825_v31, %v613_v42 }
 0x825   :  { %v624_v45 = vrot.slane %v2315_v43, 1 }
 0x827   :  { %625 = vrot.lane.b32.xlu0 %v624_v45, %s1895_s16 }
 0x899   :  { %v626_v46 = vpop.permute.xlu0 %625 }
 0x89a   :  { %1723 = vmatmul.mubr.msk.f32.vlgmr.msra.gmra.mxu1 %vm402_vm5, %v626_v46 }
 0x89b   :  { %1726 = vmatpush3.msra.mxu1 %v2178_v26  ;;  %1733 = vmatprep.mubr.msk.f32.mxu1 %vm1894_vm4, %v1892_v5 }
 0x89c   :  { %1727 = vmatprep.subr.mxu1 %v1892_v5 }
 0x89d   :  { %1728 = vmatpush3.msra.mxu1 %v2229_v41 }
 0x89e   :  { %1729 = vmatprep.subr.mxu1 %v1892_v5 }
 0x89f   :  { %1730 = vmatpush3.msra.mxu1 %v2240_v44 }
 0x8a0   :  { %1731 = vmatprep.subr.mxu1 %v1892_v5 }
 0x8a1   :  { %1732 = vmatpush3.msra.mxu1 %v2251_v49 }
 0x8a2   :  { %1747 = vmatprep.subr.mxu1 %v1892_v5 }
 0x95a   :  { %v695_v47 = vpop.f32.mrf.mxu1 }
 0x95b   :  { %v700_v48 = vrot.slane %v695_v47, 6 }
 0x95c   :  { %v1724_v50 = vpop.f32.mrf.mxu1 }
 0x95d   :  { %v702_v51 = vadd.f32 %v700_v48, %v2290_v4 }
 0x95f   :  { %v1562_v52 = vmul.f32 -1.442695, %v702_v51 }
 0x961   :  { %1828 = vpow2.f32 %v1562_v52 }
 0x96e   :  { %v1829_v53 = vpop.eup %1828 }
 0x96f   :  { %v706_v54 = vadd.f32 1.0, %v1829_v53 }
 0x971   :  { %1830 = vrcp.f32 %v706_v54 }
 0x97e   :  { %v1831_v55 = vpop.eup %1830 }
 0x97f   :  { %v709_v56 = vmul.f32 2.0, %v1831_v55  ;;  %v714_v61 = vmul.f32 %v1831_v55, %v712_v60 }
 0x981   :  { %v1563_v57 = vadd.f32 -1.0, %v709_v56 }
 0x983   :  { %716 = vrot.lane.b32.xlu1 %v1563_v57, %s1893_s27 }
 0x9f5   :  { %v717_v58 = vpop.permute.xlu1 %716 }
 0x9f6   :  { %v719_v59 = vmul.f32 %v1831_v55, %v717_v58 }
 0x9f8   :  { %721 = vrot.lane.b32.xlu0 %v719_v59, %s1895_s16 }
 0xa6a   :  { %v722_v62 = vpop.permute.xlu0 %721 }
 0xa6b   :  { %v724_v63 = vadd.f32 %v722_v62, %v714_v61 }
 0xa6d   :  { %1832 = vtanh.f32 %v724_v63  ;;  %v827_v19 = vrot.slane %v724_v63, 7 }
 0xa7a   :  { %v1833_v0 = vpop.eup %1832 }
 0xa7b   :  { %727 = vrot.lane.b32.xlu1 %v1833_v0, %s1893_s27 }
 0xaed   :  { %v728_v1 = vpop.permute.xlu1 %727 }
 0xaee   :  { %v2334_v2 = vmul.f32 %v1831_v55, %v728_v1 }
 0xaf0   :  { %v739_v3 = vrot.slane %v2334_v2, 2 }
 0xaf2   :  { %740 = vrot.lane.b32.xlu0 %v739_v3, %s1895_s16 }
 0xb64   :  { %v741_v6 = vpop.permute.xlu0 %740 }
 0xb65   :  { %1734 = vmatmul.mubr.msk.f32.vlgmr.msra.gmra.mxu1 %vm402_vm5, %v741_v6 }
 0xb66   :  { %1748 = vmatpush3.msra.mxu1 %v2178_v26  ;;  %1755 = vmatprep.mubr.msk.f32.mxu1 %vm1894_vm4, %v1892_v5 }
 0xb67   :  { %1749 = vmatprep.subr.mxu1 %v1892_v5 }
 0xb68   :  { %1750 = vmatpush3.msra.mxu1 %v2229_v41 }
 0xb69   :  { %1751 = vmatprep.subr.mxu1 %v1892_v5 }
 0xb6a   :  { %1752 = vmatpush3.msra.mxu1 %v2240_v44 }
 0xb6b   :  { %1753 = vmatprep.subr.mxu1 %v1892_v5 }
 0xb6c   :  { %1754 = vmatpush3.msra.mxu1 %v2251_v49 }
 0xb6d   :  { %1769 = vmatprep.subr.mxu1 %v1892_v5 }
 0xc25   :  { %v810_v7 = vpop.f32.mrf.mxu1 }
 0xc26   :  { %v815_v8 = vrot.slane %v810_v7, 5 }
 0xc27   :  { %v1735_v9 = vpop.f32.mrf.mxu1 }
 0xc28   :  { %v817_v10 = vadd.f32 %v815_v8, %v2290_v4 }
 0xc2a   :  { %v1565_v11 = vmul.f32 -1.442695, %v817_v10 }
 0xc2c   :  { %1834 = vpow2.f32 %v1565_v11 }
 0xc39   :  { %v1835_v12 = vpop.eup %1834 }
 0xc3a   :  { %v821_v13 = vadd.f32 1.0, %v1835_v12 }
 0xc3c   :  { %1836 = vrcp.f32 %v821_v13 }
 0xc49   :  { %v1837_v14 = vpop.eup %1836 }
 0xc4a   :  { %v824_v15 = vmul.f32 2.0, %v1837_v14  ;;  %v829_v20 = vmul.f32 %v1837_v14, %v827_v19 }
 0xc4c   :  { %v1566_v16 = vadd.f32 -1.0, %v824_v15 }
 0xc4e   :  { %831 = vrot.lane.b32.xlu1 %v1566_v16, %s1893_s27 }
 0xcc0   :  { %v832_v17 = vpop.permute.xlu1 %831 }
 0xcc1   :  { %v834_v18 = vmul.f32 %v1837_v14, %v832_v17 }
 0xcc3   :  { %836 = vrot.lane.b32.xlu0 %v834_v18, %s1895_s16 }
 0xd35   :  { %v837_v22 = vpop.permute.xlu0 %836 }
 0xd36   :  { %v839_v23 = vadd.f32 %v837_v22, %v829_v20 }
 0xd38   :  { %1838 = vtanh.f32 %v839_v23  ;;  %v942_v45 = vrot.slane %v839_v23, 7 }
 0xd45   :  { %v1839_v24 = vpop.eup %1838 }
 0xd46   :  { %842 = vrot.lane.b32.xlu1 %v1839_v24, %s1893_s27 }
 0xdb8   :  { %v843_v25 = vpop.permute.xlu1 %842 }
 0xdb9   :  { %v2353_v27 = vmul.f32 %v1837_v14, %v843_v25 }
 0xdbb   :  { %v854_v28 = vrot.slane %v2353_v27, 3 }
 0xdbd   :  { %855 = vrot.lane.b32.xlu0 %v854_v28, %s1895_s16 }
 0xe2f   :  { %v856_v29 = vpop.permute.xlu0 %855 }
 0xe30   :  { %1745 = vmatmul.mubr.msk.f32.vlgmr.msra.gmra.mxu0 %vm402_vm5, %v856_v29 }
 0xe31   :  { %1759 = vmatpush3.msra.mxu0 %v2178_v26  ;;  %1766 = vmatprep.mubr.msk.f32.mxu0 %vm1894_vm4, %v1892_v5 }
 0xe32   :  { %1760 = vmatprep.subr.mxu0 %v1892_v5 }
 0xe33   :  { %1761 = vmatpush3.msra.mxu0 %v2229_v41 }
 0xe34   :  { %1762 = vmatprep.subr.mxu0 %v1892_v5 }
 0xe35   :  { %1763 = vmatpush3.msra.mxu0 %v2240_v44 }
 0xe36   :  { %1764 = vmatprep.subr.mxu0 %v1892_v5 }
 0xe37   :  { %1765 = vmatpush3.msra.mxu0 %v2251_v49 }
 0xe38   :  { %1780 = vmatprep.subr.mxu0 %v1892_v5 }
 0xef0   :  { %v925_v30 = vpop.f32.mrf.mxu0 }
 0xef1   :  { %v930_v31 = vrot.slane %v925_v30, 4 }
 0xef2   :  { %v1746_v32 = vpop.f32.mrf.mxu0 }
 0xef3   :  { %v932_v33 = vadd.f32 %v930_v31, %v2290_v4 }
 0xef5   :  { %v1568_v34 = vmul.f32 -1.442695, %v932_v33 }
 0xef7   :  { %1840 = vpow2.f32 %v1568_v34 }
 0xf04   :  { %v1841_v35 = vpop.eup %1840 }
 0xf05   :  { %v936_v36 = vadd.f32 1.0, %v1841_v35 }
 0xf07   :  { %1842 = vrcp.f32 %v936_v36 }
 0xf14   :  { %v1843_v37 = vpop.eup %1842 }
 0xf15   :  { %v939_v38 = vmul.f32 2.0, %v1843_v37  ;;  %v944_v46 = vmul.f32 %v1843_v37, %v942_v45 }
 0xf17   :  { %v1569_v39 = vadd.f32 -1.0, %v939_v38 }
 0xf19   :  { %946 = vrot.lane.b32.xlu1 %v1569_v39, %s1893_s27 }
 0xf8b   :  { %v947_v40 = vpop.permute.xlu1 %946 }
 0xf8c   :  { %v949_v42 = vmul.f32 %v1843_v37, %v947_v40 }
 0xf8e   :  { %951 = vrot.lane.b32.xlu0 %v949_v42, %s1895_s16 }
0x1000   :  { %v952_v47 = vpop.permute.xlu0 %951 }
0x1001   :  { %v954_v48 = vadd.f32 %v952_v47, %v944_v46 }
0x1003   :  { %1844 = vtanh.f32 %v954_v48 }
0x1010   :  { %v1845_v50 = vpop.eup %1844 }
0x1011   :  { %957 = vrot.lane.b32.xlu1 %v1845_v50, %s1893_s27 }
0x1083   :  { %v958_v51 = vpop.permute.xlu1 %957 }
0x1084   :  { %v2372_v52 = vmul.f32 %v1843_v37, %v958_v51  ;;  %v502_v51 = vmax.f32 %v2296_v21, 0.0 }
0x1086   :  { %v969_v53 = vrot.slane %v2372_v52, 4 }
0x1088   :  { %970 = vrot.lane.b32.xlu0 %v969_v53, %s1895_s16  ;;  %v961_v53 = vmax.f32 %v2372_v52, 0.0 }
0x10fa   :  { %v971_v54 = vpop.permute.xlu0 %970 }
0x10fb   :  { %1756 = vmatmul.mubr.msk.f32.vlgmr.msra.gmra.mxu1 %vm402_vm5, %v971_v54 }
0x10fc   :  { %1770 = vmatpush3.msra.mxu1 %v2178_v26  ;;  %1777 = vmatprep.mubr.msk.f32.mxu1 %vm1894_vm4, %v1892_v5 }
0x10fd   :  { %1771 = vmatprep.subr.mxu1 %v1892_v5 }
0x10fe   :  { %1772 = vmatpush3.msra.mxu1 %v2229_v41 }
0x10ff   :  { %1773 = vmatprep.subr.mxu1 %v1892_v5 }
0x1100   :  { %1774 = vmatpush3.msra.mxu1 %v2240_v44 }
0x1101   :  { %1775 = vmatprep.subr.mxu1 %v1892_v5 }
0x1102   :  { %1776 = vmatpush3.msra.mxu1 %v2251_v49  ;;  %v1057_v49 = vrot.slane %v954_v48, 7 }
0x1103   :  { %1799 = vmatprep.subr.mxu1 %v1892_v5 }
0x11bb   :  { %v1040_v55 = vpop.f32.mrf.mxu1 }
0x11bc   :  { %v1045_v56 = vrot.slane %v1040_v55, 3 }
0x11bd   :  { %v1757_v26 = vpop.f32.mrf.mxu1 }
0x11be   :  { %v1047_v57 = vadd.f32 %v1045_v56, %v2290_v4 }
0x11c0   :  { %v1571_v58 = vmul.f32 -1.442695, %v1047_v57 }
0x11c2   :  { %1846 = vpow2.f32 %v1571_v58 }
0x11cf   :  { %v1847_v59 = vpop.eup %1846 }
0x11d0   :  { %v1051_v60 = vadd.f32 1.0, %v1847_v59 }
0x11d2   :  { %1848 = vrcp.f32 %v1051_v60  ;;  %v616_v60 = vmax.f32 %v2315_v43, 0.0 }
0x11df   :  { %v1849_v41 = vpop.eup %1848 }
0x11e0   :  { %v1054_v61 = vmul.f32 2.0, %v1849_v41  ;;  %v1059_v0 = vmul.f32 %v1849_v41, %v1057_v49 }
0x11e2   :  { %v1572_v62 = vadd.f32 -1.0, %v1054_v61 }
0x11e4   :  { %1061 = vrot.lane.b32.xlu1 %v1572_v62, %s1893_s27 }
0x1256   :  { %v1062_v44 = vpop.permute.xlu1 %1061 }
0x1257   :  { %v1064_v63 = vmul.f32 %v1849_v41, %v1062_v44  ;;  %v1327_v44 = vld [vmem:[%s2498_s2 + $0x1b8] sm:$0xff] }
0x1259   :  { %1066 = vrot.lane.b32.xlu0 %v1064_v63, %s1895_s16  ;;  %v1326_v63 = vld [vmem:[%s2498_s2 + $0x1b0] sm:$0xff] }
0x12cb   :  { %v1067_v1 = vpop.permute.xlu0 %1066 }
0x12cc   :  { %v1069_v3 = vadd.f32 %v1067_v1, %v1059_v0  ;;  %v1324_v1 = vld [vmem:[%s2498_s2 + $0x1a0] sm:$0xff] }
0x12ce   :  { %1850 = vtanh.f32 %v1069_v3  ;;  %v1172_v24 = vrot.slane %v1069_v3, 7  ;;  %v1323_v3 = vld [vmem:[%s2498_s2 + $0x198] sm:$0xff] }
0x12db   :  { %v1851_v6 = vpop.eup %1850 }
0x12dc   :  { %1072 = vrot.lane.b32.xlu1 %v1851_v6, %s1893_s27 }
0x134e   :  { %v1073_v7 = vpop.permute.xlu1 %1072 }
0x134f   :  { %v2391_v8 = vmul.f32 %v1849_v41, %v1073_v7  ;;  %v846_v41 = vmax.f32 %v2353_v27, 0.0  ;;  %v1325_v27 = vld [vmem:[%s2498_s2 + $0x1a8] sm:$0xff]  ;;  %v1322_v7 = vld [vmem:[%s2498_s2 + $0x190] sm:$0xff] }
0x1351   :  { %v1084_v9 = vrot.slane %v2391_v8, 5  ;;  %v1076_v61 = vmax.f32 %v2391_v8, 0.0  ;;  %v1321_v8 = vld [vmem:[%s2498_s2 + $0x188] sm:$0xff] }
0x1353   :  { %1085 = vrot.lane.b32.xlu0 %v1084_v9, %s1895_s16 }
0x13c5   :  { %v1086_v10 = vpop.permute.xlu0 %1085 }
0x13c6   :  { %1767 = vmatmul.mubr.msk.f32.vlgmr.msra.gmra.mxu0 %vm402_vm5, %v1086_v10  ;;  %v1320_v10 = vld [vmem:[%s2498_s2 + $0x180] sm:$0xff] }
0x13c7   :  { %1796 = vmatprep.mubr.msk.f32.mxu0 %vm1894_vm4, %v1892_v5  ;;  %1781 = vmatpush3.msra.mxu0 %v1327_v44 }
0x13c8   :  { %1782 = vmatprep.subr.mxu0 %v1892_v5 }
0x13c9   :  { %1783 = vmatpush3.msra.mxu0 %v1326_v63 }
0x13ca   :  { %1784 = vmatprep.subr.mxu0 %v1892_v5 }
0x13cb   :  { %1785 = vmatpush3.msra.mxu0 %v1325_v27 }
0x13cc   :  { %1786 = vmatprep.subr.mxu0 %v1892_v5 }
0x13cd   :  { %1787 = vmatpush3.msra.mxu0 %v1324_v1 }
0x13ce   :  { %1788 = vmatprep.subr.mxu0 %v1892_v5 }
0x13cf   :  { %1789 = vmatpush3.msra.mxu0 %v1323_v3 }
0x13d0   :  { %1790 = vmatprep.subr.mxu0 %v1892_v5 }
0x13d1   :  { %1791 = vmatpush3.msra.mxu0 %v1322_v7 }
0x13d2   :  { %1792 = vmatprep.subr.mxu0 %v1892_v5 }
0x13d3   :  { %1793 = vmatpush3.msra.mxu0 %v1321_v8 }
0x13d4   :  { %1794 = vmatprep.subr.mxu0 %v1892_v5 }
0x13d5   :  { %1795 = vmatpush3.msra.mxu0 %v1320_v10 }
0x1486   :  { %v1155_v11 = vpop.f32.mrf.mxu0 }
0x1487   :  { %v1160_v12 = vrot.slane %v1155_v11, 2 }
0x1488   :  { %v1768_v13 = vpop.f32.mrf.mxu0 }
0x1489   :  { %v1162_v14 = vadd.f32 %v1160_v12, %v2290_v4  ;;  %v1314_v13 = vld [vmem:[%s2497_s1] sm:$0xff] }
0x148b   :  { %v1574_v15 = vmul.f32 -1.442695, %v1162_v14 }
0x148d   :  { %1852 = vpow2.f32 %v1574_v15 }
0x149a   :  { %v1853_v16 = vpop.eup %1852 }
0x149b   :  { %v1166_v17 = vadd.f32 1.0, %v1853_v16  ;;  %v1416_v16 = vld [vmem:[%s2500_s4 + $0x18] sm:$0xff] }
0x149d   :  { %1854 = vrcp.f32 %v1166_v17  ;;  %v1415_v17 = vld [vmem:[%s2500_s4 + $0x10] sm:$0xff] }
0x14aa   :  { %v1855_v18 = vpop.eup %1854 }
0x14ab   :  { %v1169_v19 = vmul.f32 2.0, %v1855_v18  ;;  %v1174_v25 = vmul.f32 %v1855_v18, %v1172_v24 }
0x14ad   :  { %v1575_v20 = vadd.f32 -1.0, %v1169_v19  ;;  %v1413_v19 = vld [vmem:[%s2500_s4] sm:$0xff] }
0x14af   :  { %1176 = vrot.lane.b32.xlu1 %v1575_v20, %s1893_s27  ;;  %v1579_v20 = vld [vmem:[%s2498_s2 + $0x1d0] ss:$0 sm:$0xff] }
0x1521   :  { %v1177_v22 = vpop.permute.xlu1 %1176 }
0x1522   :  { %v1179_v23 = vmul.f32 %v1855_v18, %v1177_v22 }
0x1524   :  { %1181 = vrot.lane.b32.xlu0 %v1179_v23, %s1895_s16 }
0x1596   :  { %v1182_v28 = vpop.permute.xlu0 %1181 }
0x1597   :  { %v1184_v29 = vadd.f32 %v1182_v28, %v1174_v25 }
0x1599   :  { %1856 = vtanh.f32 %v1184_v29  ;;  %v1287_v55 = vrot.slane %v1184_v29, 7 }
0x15a6   :  { %v1857_v30 = vpop.eup %1856 }
0x15a7   :  { %1187 = vrot.lane.b32.xlu1 %v1857_v30, %s1893_s27 }
0x1619   :  { %v1188_v31 = vpop.permute.xlu1 %1187 }
0x161a   :  { %v1190_v32 = vmul.f32 %v1855_v18, %v1188_v31  ;;  %v1414_v18 = vld [vmem:[%s2500_s4 + $0x8] sm:$0xff] }
0x161c   :  { %v1199_v33 = vrot.slane %v1190_v32, 6  ;;  %v1191_v54 = vmax.f32 %v1190_v32, 0.0 }
0x161e   :  { %1200 = vrot.lane.b32.xlu0 %v1199_v33, %s1895_s16 }
0x1690   :  { %v1201_v34 = vpop.permute.xlu0 %1200 }
0x1691   :  { %1778 = vmatmul.mubr.msk.f32.vlgmr.msra.gmra.mxu1 %vm402_vm5, %v1201_v34 }
0x1692   :  { %1807 = vmatprep.mubr.msk.f32.mxu1 %vm1894_vm4, %v1892_v5  ;;  %1800 = vmatpush3.msra.mxu1 %v1416_v16 }
0x1693   :  { %1801 = vmatprep.subr.mxu1 %v1892_v5 }
0x1694   :  { %1802 = vmatpush3.msra.mxu1 %v1415_v17 }
0x1695   :  { %1803 = vmatprep.subr.mxu1 %v1892_v5 }
0x1696   :  { %1804 = vmatpush3.msra.mxu1 %v1414_v18 }
0x1697   :  { %1805 = vmatprep.subr.mxu1 %v1892_v5  ;;  %v1582_v5 = vld [vmem:[%s2500_s4 + $0x20] ss:$0 sm:$0xff] }
0x1698   :  { %1806 = vmatpush3.msra.mxu1 %v1413_v19 }
0x1751   :  { %v1270_v35 = vpop.f32.mrf.mxu1 }
0x1752   :  { %v1275_v36 = vrot.slane %v1270_v35, 1 }
0x1753   :  { %v1779_v37 = vpop.f32.mrf.mxu1 }
0x1754   :  { %v1277_v38 = vadd.f32 %v1275_v36, %v2290_v4  ;;  %v731_v4 = vmax.f32 %v2334_v2, 0.0 }
0x1756   :  { %v1577_v39 = vmul.f32 -1.442695, %v1277_v38 }
0x1758   :  { %1858 = vpow2.f32 %v1577_v39 }
0x1765   :  { %v1859_v40 = vpop.eup %1858 }
0x1766   :  { %v1281_v42 = vadd.f32 1.0, %v1859_v40 }
0x1768   :  { %1860 = vrcp.f32 %v1281_v42 }
0x1775   :  { %v1861_v45 = vpop.eup %1860 }
0x1776   :  { %v1284_v46 = vmul.f32 2.0, %v1861_v45  ;;  %v1289_v56 = vmul.f32 %v1861_v45, %v1287_v55 }
0x1778   :  { %v1578_v47 = vadd.f32 -1.0, %v1284_v46 }
0x177a   :  { %1291 = vrot.lane.b32.xlu1 %v1578_v47, %s1893_s27 }
0x17ec   :  { %v1292_v48 = vpop.permute.xlu1 %1291 }
0x17ed   :  { %v1294_v50 = vmul.f32 %v1861_v45, %v1292_v48 }
0x17ef   :  { %1296 = vrot.lane.b32.xlu0 %v1294_v50, %s1895_s16 }
0x17f3   :  { %504 = vrot.lane.b32.xlu0 %v502_v51, %s1895_s16 }
0x17f7   :  { %733 = vrot.lane.b32.xlu0 %v731_v4, %s1895_s16 }
0x17fb   :  { %963 = vrot.lane.b32.xlu0 %v961_v53, %s1895_s16 }
0x17ff   :  { %1193 = vrot.lane.b32.xlu0 %v1191_v54, %s1895_s16 }
0x1861   :  { %v1297_v26 = vpop.permute.xlu0 %1296 }
0x1862   :  { %v1299_v57 = vadd.f32 %v1297_v26, %v1289_v56 }
0x1864   :  { %1862 = vtanh.f32 %v1299_v57 }
0x1865   :  { %v505_v21 = vpop.permute.xlu0 %504 }
0x1866   :  { %508 = vst.msk [vmem:[#allocation2] sm:$0x1] %vm507_vm6, %v505_v21  ;;  %v1584_v21 = vld [vmem:[%s2500_s4 + $0x28] ss:$0 sm:$0xff] }
0x1869   :  { %v734_v58 = vpop.permute.xlu0 %733 }
0x186a   :  { %737 = vst.msk [vmem:[#allocation2] sm:$0x4] %vm736_vm7, %v734_v58 }
0x186d   :  { %v964_v2 = vpop.permute.xlu0 %963 }
0x186e   :  { %967 = vst.msk [vmem:[#allocation2] sm:$0x10] %vm966_vm8, %v964_v2 }
0x1871   :  { %v1863_v52 = vpop.eup %1862  ;;  %v1194_v59 = vpop.permute.xlu0 %1193 }
0x1872   :  { %1197 = vst.msk [vmem:[#allocation2] sm:$0x40] %vm1196_vm9, %v1194_v59  ;;  %1302 = vrot.lane.b32.xlu1 %v1863_v52, %s1893_s27  ;;  %v1585_v52 = vld [vmem:[%s2500_s4 + $0x30] ss:$0 sm:$0xff] }
0x1876   :  { %618 = vrot.lane.b32.xlu1 %v616_v60, %s1895_s16 }
0x187a   :  { %848 = vrot.lane.b32.xlu1 %v846_v41, %s1895_s16 }
0x187e   :  { %1078 = vrot.lane.b32.xlu1 %v1076_v61, %s1895_s16 }
0x18e4   :  { %v1303_v62 = vpop.permute.xlu1 %1302 }
0x18e5   :  { %v1305_v43 = vmul.f32 %v1861_v45, %v1303_v62 }
0x18e7   :  { %v1306_v49 = vmax.f32 %v1305_v43, 0.0 }
0x18e8   :  { %v619_v0 = vpop.permute.xlu1 %618 }
0x18e9   :  { %622 = vst.msk [vmem:[#allocation2] sm:$0x2] %vm621_vm10, %v619_v0  ;;  %1308 = vrot.lane.b32.xlu1 %v1306_v49, %s1895_s16 }
0x18ec   :  { %v849_v6 = vpop.permute.xlu1 %848 }
0x18ed   :  { %852 = vst.msk [vmem:[#allocation2] sm:$0x8] %vm851_vm11, %v849_v6 }
0x18f0   :  { %v1079_v9 = vpop.permute.xlu1 %1078 }
0x18f1   :  { %1082 = vst.msk [vmem:[#allocation2] sm:$0x20] %vm1081_vm12, %v1079_v9 }
0x195b   :  { %v1309_v11 = vpop.permute.xlu1 %1308 }
0x195c   :  { %1312 = vst.msk [vmem:[#allocation2] sm:$0x80] %vm1311_vm13, %v1309_v11 }
0x1963   :  { %v1313_v12 = vld [vmem:[#allocation2] sm:$0xff] }
0x1964   :  { %1316 = vrot.lane.b32.xlu0 %v1313_v12, %s1895_s16 }
0x19d6   :  { %v1317_v14 = vpop.permute.xlu0 %1316 }
0x19d7   :  { %v1319_v15 = vsel %vm402_vm5, %v1314_v13, %v1317_v14 }
0x19d8   :  { %1797 = vmatmul.mubr.msk.f32.vlgmr.msra.gmra.mxu0 %vm39_vm2, %v1319_v15 }
0x1a98   :  { %v1402_v22 = vpop.f32.mrf.mxu0 }
0x1a99   :  { %v1403_v23 = vadd.f32 %v1579_v20, %v1402_v22 }
0x1a9a   :  { %v1798_v24 = vpop.f32.mrf.mxu0 }
0x1a9b   :  { %v1412_v25 = vmax.f32 %v1403_v23, 0.0  ;;  %v1581_v29 = vmul.f32 -1.442695, %v1403_v23 }
0x1a9d   :  { %1423 = vrot.lane.b32.xlu1 %v1412_v25, %s1896_s3  ;;  %1864 = vpow2.f32 %v1581_v29 }
0x1aaa   :  { %v1865_v30 = vpop.eup %1864 }
0x1aab   :  { %v1409_v31 = vadd.f32 1.0, %v1865_v30 }
0x1aad   :  { %1866 = vrcp.f32 %v1409_v31 }
0x1aba   :  { %v1867_v34 = vpop.eup %1866 }
0x1b0f   :  { %v1424_v28 = vpop.permute.xlu1 %1423 }
0x1b10   :  { %1808 = vmatmul.mubr.msk.f32.vlgmr.msra.gmra.mxu1 %vm402_vm5, %v1424_v28 }
0x1bd0   :  { %v1493_v32 = vpop.f32.mrf.mxu1 }
0x1bd1   :  { %v1494_v33 = vadd.f32 %v1582_v5, %v1493_v32 }
0x1bd2   :  { %v1809_v35 = vpop.f32.mrf.mxu1 }
0x1bd3   :  { %v1497_v36 = vmul.f32 %v1867_v34, %v1494_v33 }
0x1bd5   :  { %v1498_v37 = vsel %vm402_vm5, %v1497_v36, 0.0 }
0x1bd6   :  { %v1499_v38 = vrot.slane %v1498_v37, 4 }
0x1bd8   :  { %v1500_v39 = vadd.f32 %v1499_v38, %v1498_v37 }
0x1bda   :  { %v1501_v40 = vrot.slane %v1500_v39, 2 }
0x1bdc   :  { %v1502_v42 = vadd.f32 %v1501_v40, %v1500_v39 }
0x1bde   :  { %v1503_v45 = vrot.slane %v1502_v42, 1 }
0x1be0   :  { %v1504_v46 = vadd.f32 %v1503_v45, %v1502_v42 }
0x1be2   :  { %v1506_v47 = vmul.f32 0.125, %v1504_v46 }
0x1be4   :  { %v1507_v48 = vadd.f32 %v1506_v47, %v1314_v13 }
0x1be6   :  { %v1508_v50 = vsel %vm402_vm5, %v1507_v48, 0.0 }
0x1be7   :  { %1509 = vadd.xlane.f32.xlu0 %v1508_v50 }
0x1c70   :  { %v1510_v51 = vpop.xlane.xlu0 %1509 }
0x1c71   :  { %v1512_v4 = vmul.f32 0.03125, %v1510_v51 }
0x1c73   :  { %v1513_v53 = vsub.f32 %v1507_v48, %v1512_v4 }
0x1c75   :  { %v1514_v54 = vmul.f32 %v1513_v53, %v1513_v53  ;;  %v1524_v58 = vmul.f32 %v1584_v21, %v1513_v53 }
0x1c77   :  { %v1515_v55 = vsel %vm402_vm5, %v1514_v54, 0.0 }
0x1c78   :  { %1516 = vadd.xlane.f32.xlu1 %v1515_v55 }
0x1d01   :  { %v1517_v56 = vpop.xlane.xlu1 %1516 }
0x1d02   :  { %v1518_v26 = vmul.f32 0.03125, %v1517_v56 }
0x1d04   :  { %v1525_v57 = vadd.f32 1e-06, %v1518_v26 }
0x1d06   :  { %1868 = vrsqrt.f32 %v1525_v57 }
0x1d13   :  { %v1869_v2 = vpop.eup %1868 }
0x1d14   :  { %v1527_v59 = vmul.f32 %v1869_v2, %v1524_v58 }
0x1d16   :  { %v1533_v60 = vadd.f32 %v1585_v52, %v1527_v59 }
0x1d18   :  { %1534 = vst.msk [vmem:[#allocation3] sm:$0xff] %vm402_vm5, %v1533_v60 }
0x1d19   :  { %1881 = shalt.err (!%p1878_p4)
}
0x1d1a   :  { %1544 = dma.vmem_to_hbm [thread:$0]  %s1542_s22, 128, %s2501_s5, [#allocation4]  }
0x1d1b   :  { %1890 = dma.done.wait [#allocation4], 128  }
0x1d1c   :  { %1891 = vsyncadd [#allocation4], 4294967168 }
0x1d1d   :  { %1548 = vsyncpa [#allocation4], 1 }

</bundles_post_ra>
